<compile_context>
chip_gen: v7x
topology: tpu7x:2x2x1
jax: 0.10.0
libtpu: 0.0.40
codegen_flags: <defaults>
</compile_context>

<pallas_src>
import functools

import numpy as np
import jax
import jax.numpy as jnp
from jax.experimental import pallas as pl
from jax.experimental.pallas import tpu as pltpu


# ------------------------------ math helpers ---------------------------------

def _rmsnorm(x, w, eps=1e-8):
    # TODO(synk): RMSNorm class is not included in the spec; assumes the common RetNet
    # form x * rsqrt(mean(x^2, -1) + eps) * weight.
    return x * jax.lax.rsqrt(jnp.mean(x * x, axis=-1, keepdims=True) + eps) * w


def _erf_poly(x):
    # Abramowitz & Stegun 7.1.26 (abs err ~1.5e-7), built from exp + basic VPU ops so it
    # lowers cleanly in Mosaic.  Exact divide on purpose (an approx reciprocal here does
    # NOT cancel downstream and was the rev-2 accuracy bug).
    a1, a2, a3, a4, a5 = 0.254829592, -0.284496736, 1.421413741, -1.453152027, 1.061405429
    p = 0.3275911
    sgn = jnp.where(x >= 0.0, 1.0, -1.0)
    ax = jnp.abs(x)
    t = 1.0 / (1.0 + p * ax)
    poly = ((((a5 * t + a4) * t + a3) * t + a2) * t + a1) * t
    return sgn * (1.0 - poly * jnp.exp(-ax * ax))


def _gelu_exact_kernel(x):
    return 0.5 * x * (1.0 + _erf_poly(x * np.float32(0.7071067811865476)))


def _rotate_half_split(u, half):
    # rotate_half in the de-interleaved ("half split") layout: (a, b) -> (-b, a).
    return jnp.concatenate([-u[..., half:], u[..., :half]], axis=-1)


# ----------------------------------- kernel ----------------------------------

def _block_kernel(x_ref, w_in_ref, wlog_ref, wm1_ref, wm2_ref, vec_ref, rope_ref,
                  o_ref, y_scr, *, Bc, T, C, heads, key_dim, value_dim, valuebd):
    f32 = jnp.float32
    R = Bc * T                                      # rows handled by this grid step
    Dk, Dv, half = key_dim, value_dim, key_dim // 2

    x = x_ref[...]                                  # (R, C) f32 residual stream
    vec = vec_ref[...]                              # (7, 2C+2V) packed f32 vectors
    b_in = vec[0:1, :]                              # fused projection bias
    blog = vec[1:2, :C]
    bm1 = vec[2:3, :2 * C]
    bm2 = vec[3:4, :C]
    gnw = vec[4:5, :Dv]
    ln1w = vec[5:6, :C]
    ln2w = vec[6:7, :C]

    cos = rope_ref[0]                               # (T, Dk) half-split rotary tables
    sin = rope_ref[1]
    if Bc > 1:                                      # tile over the Bc batches in this step
        cos = jnp.concatenate([cos] * Bc, axis=0)
        sin = jnp.concatenate([sin] * Bc, axis=0)

    wdt = w_in_ref.dtype                            # bf16 (MXU fast path) or f32

    # Fused q/k/v/gate projection: one lane-dense (C, 2C+2V) MXU pass, f32 accumulate.
    xp = jnp.dot(x.astype(wdt), w_in_ref[...], preferred_element_type=f32) + b_in
    q = xp[:, :C]                                   # columns pre-permuted (half-split)
    k = xp[:, C:2 * C]                              # pre-scaled by C**-0.5
    v = xp[:, 2 * C:2 * C + valuebd]
    gate = xp[:, 2 * C + valuebd:]

    # Block-diagonal (over the Bc batches) causal structure, built from iota only
    # (no precomputed (H,T,T) HBM constant, no integer div/mod).
    ri = jax.lax.broadcasted_iota(jnp.int32, (R, R), 0)
    rj = jax.lax.broadcasted_iota(jnp.int32, (R, R), 1)
    blocks = []
    for b in range(Bc):
        lo, hi = b * T, (b + 1) * T
        blocks.append((ri >= lo) & (ri < hi) & (rj >= lo) & (rj < hi) & (ri >= rj))
    causal = functools.reduce(jnp.logical_or, blocks)
    causal_f = causal.astype(f32)
    diff = jnp.where(causal, (ri - rj).astype(f32), 0.0)     # mask BEFORE the exp
    t1 = (jax.lax.broadcasted_iota(jnp.int32, (T, 1), 0) + 1).astype(f32)   # t+1

    for h in range(heads):                          # static, heads is small
        qh = q[:, h * Dk:(h + 1) * Dk]
        kh = k[:, h * Dk:(h + 1) * Dk]
        vh = v[:, h * Dv:(h + 1) * Dv]

        # Rotary in half-split layout; exactly equivalent to the interleaved rotary of
        # the reference because the q/k weight columns were permuted consistently.
        qh = qh * cos + _rotate_half_split(qh, half) * sin
        kh = kh * cos + _rotate_half_split(kh, half) * sin

        # Per-head decay mask.  Closed-form row-sum:
        #   sum_{j<=t} exp(g*(t-j)) = (1 - exp(g*(t+1))) / (1 - exp(g)),  1-exp(g) = 2^-(5+h)
        g = float(np.log1p(-(2.0 ** (-5.0 - h))))
        rscale = jax.lax.rsqrt((1.0 - jnp.exp(g * t1)) * float(2.0 ** (5 + h)))  # (T,1)
        if Bc > 1:
            rscale = jnp.concatenate([rscale] * Bc, axis=0)                      # (R,1)
        decay = jnp.exp(g * diff) * causal_f * rscale

        # Retention core: one full (R,R) MXU tile per stage (cross-batch blocks are
        # zeroed by the mask, so the |s| row-sum and s@v are unaffected).
        s = jax.lax.dot_general(qh, kh, (((1,), (1,)), ((), ())),
                                preferred_element_type=f32) * decay
        denom = jnp.clip(jnp.sum(jnp.abs(s), axis=-1, keepdims=True), 1.0, 50000.0)
        s = s * pl.reciprocal(denom, approx=True)   # per-row scale; cancels in RMSNorm
        oh = jnp.dot(s, vh, preferred_element_type=f32)
        y_scr[:, h * Dv:(h + 1) * Dv] = _rmsnorm(oh, gnw)

    y = y_scr[...]                                  # (R, valuebd), lane-dense
    gate = gate * jax.nn.sigmoid(gate)              # SiLU
    ret = jnp.dot((gate * y).astype(wdt), wlog_ref[...],
                  preferred_element_type=f32) + blog

    # Block residual structure (residual stream / norms / GELU stay f32).
    x1 = x + _rmsnorm(ret, ln1w)
    h1 = _gelu_exact_kernel(jnp.dot(x1.astype(wdt), wm1_ref[...],
                                    preferred_element_type=f32) + bm1)
    m = jnp.dot(h1.astype(wdt), wm2_ref[...], preferred_element_type=f32) + bm2
    o_ref[...] = x1 + _rmsnorm(m, ln2w)

    # TODO(synk): long-T variant needs flash-style kv tiling with an online |s|-sum and
    # running clamp; size kv tiles against v7x's 64 MiB VMEM (32 MiB default scoped) and
    # set vmem_limit_bytes explicitly.  At T=8 a single resident block is optimal.


# -------------------------- parameters & packing ------------------------------

def init_params(key, C, heads, valuebd):
    """Synthetic parameters matching the module's shapes (weights stored (in, out))."""
    Dv = valuebd // heads
    ks = jax.random.split(key, 9)

    def lin(k, fan_in, fan_out, gain=1.0):
        kw, kb = jax.random.split(k)
        lim = gain * np.sqrt(6.0 / (fan_in + fan_out))
        w = jax.random.uniform(kw, (fan_in, fan_out), jnp.float32, -lim, lim)
        b = jax.random.uniform(kb, (fan_out,), jnp.float32, -0.05, 0.05)
        return w, b

    p = {}
    p['wqk'], p['bqk'] = lin(ks[0], C, 2 * C, gain=2 ** -2.5)      # to_qk
    p['wv'], p['bv'] = lin(ks[1], C, valuebd, gain=2 ** -2.5)      # to_v
    p['wg'], p['bg'] = lin(ks[2], C, valuebd, gain=2 ** -2.5)      # to_g
    p['wlog'], p['blog'] = lin(ks[3], valuebd, C, gain=2 ** -1)    # to_logits
    p['wm1'], p['bm1'] = lin(ks[4], C, 2 * C)                      # FeedForward.ln1
    p['wm2'], p['bm2'] = lin(ks[5], 2 * C, C)                      # FeedForward.proj
    p['gnw'] = 1.0 + 0.1 * jax.random.normal(ks[6], (Dv,), jnp.float32)   # RMSNorm(value_dim)
    p['ln1w'] = 1.0 + 0.1 * jax.random.normal(ks[7], (C,), jnp.float32)   # Block.ln1
    p['ln2w'] = 1.0 + 0.1 * jax.random.normal(ks[8], (C,), jnp.float32)   # Block.ln2
    return p


def pack_block_params(params, *, T, C, heads, key_dim, valuebd, scaling,
                      matmul_dtype=jnp.bfloat16):
    """One-time (init-time) repacking for the kernel:
       * fuse to_qk / to_v / to_g into a single (C, 2C+2V) weight,
       * permute q/k columns to the half-split rotary layout and fold C**-0.5 into K,
       * cast the four dense matmul weights to `matmul_dtype` (bf16 MXU fast path),
       * pack all bias / norm vectors into one (7, 2C+2V) f32 buffer,
       * build half-split cos/sin tables of shape (2, T, key_dim)."""
    PW = 2 * C + 2 * valuebd
    # Per-head de-interleave permutation: [0,2,...,Dk-2, 1,3,...,Dk-1].
    base = np.concatenate([np.arange(0, key_dim, 2), np.arange(1, key_dim, 2)])
    perm = np.concatenate([h * key_dim + base for h in range(heads)])

    wq = params['wqk'][:, :C][:, perm]
    wk = params['wqk'][:, C:][:, perm] * scaling
    w_in = jnp.concatenate([wq, wk, params['wv'], params['wg']], axis=1)
    bq = params['bqk'][:C][perm]
    bk = params['bqk'][C:][perm] * scaling
    b_in = jnp.concatenate([bq, bk, params['bv'], params['bg']])

    def pad(v):
        return jnp.pad(v, (0, PW - v.shape[0]))

    vecpack = jnp.stack([pad(b_in), pad(params['blog']), pad(params['bm1']),
                         pad(params['bm2']), pad(params['gnw']),
                         pad(params['ln1w']), pad(params['ln2w'])]).astype(jnp.float32)

    t = np.arange(T, dtype=np.float32)
    inv_freq = 1.0 / (10000.0 ** (np.arange(0, key_dim, 2, dtype=np.float32) / key_dim))
    fr = t[:, None] * inv_freq[None, :]                              # (T, Dk/2)
    rope = np.stack([np.concatenate([np.cos(fr), np.cos(fr)], axis=-1),
                     np.concatenate([np.sin(fr), np.sin(fr)], axis=-1)]).astype(np.float32)

    return {'w_in': w_in.astype(matmul_dtype),
            'wlog': params['wlog'].astype(matmul_dtype),
            'wm1': params['wm1'].astype(matmul_dtype),
            'wm2': params['wm2'].astype(matmul_dtype),
            'vecpack': vecpack,
            'rope': jnp.asarray(rope)}


def default_batch_tiles(B):
    """v7x has 2 TensorCores/chip: shard the (parallel) batch-tile grid across them.
    On 1-TC chips (v5e/v6e) an extra grid step only adds the per-step floor."""
    try:
        kind = jax.devices()[0].device_kind.lower()
    except Exception:
        kind = ""
    two_core = ("v7" in kind) or ("7x" in kind)
    return 2 if (two_core and B >= 2 and B % 2 == 0) else 1


def block_forward_pallas(x, packed, *, heads, key_dim, value_dim, batch_tiles=1):
    B, T, C = x.shape
    valuebd = heads * value_dim
    assert B % batch_tiles == 0
    Bc = B // batch_tiles
    R = Bc * T                                       # rows per grid step

    kernel = functools.partial(_block_kernel, Bc=Bc, T=T, C=C, heads=heads,
                               key_dim=key_dim, value_dim=value_dim, valuebd=valuebd)
    args = (x.reshape(B * T, C), packed['w_in'], packed['wlog'], packed['wm1'],
            packed['wm2'], packed['vecpack'], packed['rope'])

    def const_spec(a):   # weights / vectors / rope stay resident across grid steps
        return pl.BlockSpec(a.shape, lambda i, _nd=a.ndim: (0,) * _nd)

    in_specs = ([pl.BlockSpec((R, C), lambda i: (i, 0))] +
                [const_spec(a) for a in args[1:]])

    out = pl.pallas_call(
        kernel,
        out_shape=jax.ShapeDtypeStruct((B * T, C), jnp.float32),
        grid=(batch_tiles,),
        in_specs=in_specs,
        out_specs=pl.BlockSpec((R, C), lambda i: (i, 0)),
        scratch_shapes=[pltpu.VMEM((R, valuebd), jnp.float32)],
        compiler_params=pltpu.CompilerParams(dimension_semantics=("parallel",)),
    )(*args)
    return out.reshape(B, T, C)


# ------------------------------ pure-JAX reference -----------------------------

def _reference_forward(x, p, *, heads, key_dim, value_dim, scaling):
    """Pure-JAX re-implementation of Block.forward (parallel retention, eval mode) using
    the original (unfused, unpermuted) weights, interleaved rotary and true f32 matmuls."""
    with jax.default_matmul_precision("float32"):
        B, T, C = x.shape
        qk = x @ p['wqk'] + p['bqk']
        q, k = qk[..., :C], qk[..., C:] * scaling
        v = x @ p['wv'] + p['bv']
        q = q.reshape(B, T, heads, key_dim).transpose(0, 2, 1, 3)
        k = k.reshape(B, T, heads, key_dim).transpose(0, 2, 1, 3)
        v = v.reshape(B, T, heads, value_dim).transpose(0, 2, 1, 3)

        # Interleaved rotary embedding (rotary_embedding_torch conventions, theta=10000).
        t = jnp.arange(T, dtype=jnp.float32)
        inv_freq = 1.0 / (10000.0 ** (jnp.arange(0, key_dim, 2, dtype=jnp.float32) / key_dim))
        fr = t[:, None] * inv_freq[None, :]
        cos = jnp.repeat(jnp.cos(fr), 2, axis=-1)
        sin = jnp.repeat(jnp.sin(fr), 2, axis=-1)

        def rot_half(u):
            u2 = u.reshape(*u.shape[:-1], key_dim // 2, 2)
            return jnp.stack([-u2[..., 1], u2[..., 0]], axis=-1).reshape(u.shape)

        q = q * cos + rot_half(q) * sin
        k = k * cos + rot_half(k) * sin

        # Decay mask: get_info_mask(T)[0].
        gamma = jnp.log(1.0 - 2.0 ** (-5.0 - jnp.arange(heads, dtype=jnp.float32)))
        tril = t[:, None] >= t[None, :]
        diff = jnp.where(tril, t[:, None] - t[None, :], jnp.inf)
        mask = jnp.nan_to_num(jnp.exp(gamma[:, None, None] * diff))
        mask = mask / jnp.sqrt(jnp.sum(mask, axis=-1, keepdims=True))

        s = jnp.einsum('bhtd,bhsd->bhts', q, k) * mask
        s = s / jnp.clip(jnp.sum(jnp.abs(s), axis=-1, keepdims=True), 1.0, 50000.0)
        o = jnp.einsum('bhts,bhsd->bhtd', s, v).transpose(0, 2, 1, 3)    # (B,T,H,Dv)
        y = _rmsnorm(o, p['gnw']).reshape(B, T, heads * value_dim)

        ret = (jax.nn.silu(x @ p['wg'] + p['bg']) * y) @ p['wlog'] + p['blog']
        x1 = x + _rmsnorm(ret, p['ln1w'])

        def gelu(z):   # exact (erf) GELU, as nn.GELU()
            return 0.5 * z * (1.0 + jax.scipy.special.erf(z * np.float32(0.7071067811865476)))

        h1 = gelu(x1 @ p['wm1'] + p['bm1'])
        m = h1 @ p['wm2'] + p['bm2']
        return x1 + _rmsnorm(m, p['ln2w'])


# ------------------------------------ main ------------------------------------

if __name__ == "__main__":
    # config: n_embd=32, n_heads=2, valuebd=32, block_size=8, dropout=0.0 (eval)
    B, T, C, heads, valuebd = 2, 8, 32, 2, 32
    key_dim, value_dim = C // heads, valuebd // heads
    scaling = float(C ** -0.5)

    key = jax.random.PRNGKey(0)
    kx, kp = jax.random.split(key)
    x = jax.random.normal(kx, (B, T, C), jnp.float32)
    params = init_params(kp, C, heads, valuebd)

    ref = np.asarray(jax.block_until_ready(
        _reference_forward(x, params, heads=heads, key_dim=key_dim,
                           value_dim=value_dim, scaling=scaling)))

    # 1) Exact-semantics check: f32 matmul path, both grid layouts (single step with the
    #    block-diagonal mask, and the 2-step "parallel" layout used on v7x).
    packed_f32 = pack_block_params(params, T=T, C=C, heads=heads, key_dim=key_dim,
                                   valuebd=valuebd, scaling=scaling,
                                   matmul_dtype=jnp.float32)
    for bt in (1, 2):
        out = jax.block_until_ready(
            block_forward_pallas(x, packed_f32, heads=heads, key_dim=key_dim,
                                 value_dim=value_dim, batch_tiles=bt))
        np.testing.assert_allclose(np.asarray(out), ref, atol=1e-3, rtol=1e-3)

    # 2) MXU fast path: bf16 operands + f32 accumulation on the four dense matmuls
    #    (review item #1).  Tolerance reflects bf16 operand epsilon (~2^-9) amplified
    #    through 4 matmuls and 3 RMSNorms of the residual stream.
    packed_bf16 = pack_block_params(params, T=T, C=C, heads=heads, key_dim=key_dim,
                                    valuebd=valuebd, scaling=scaling,
                                    matmul_dtype=jnp.bfloat16)
    out_bf16 = jax.block_until_ready(
        block_forward_pallas(x, packed_bf16, heads=heads, key_dim=key_dim,
                             value_dim=value_dim, batch_tiles=default_batch_tiles(B)))
    out_bf16 = np.asarray(out_bf16)
    assert np.all(np.isfinite(out_bf16))
    np.testing.assert_allclose(out_bf16, ref, atol=1e-1, rtol=1e-1)

    # TODO(synk): chunkwise / recurrent retention paths and train-mode dropout are not
    # implemented (the reference forward with defaults uses the parallel path, eval).
    print("KERNEL_OK")
</pallas_src>

<mosaic_0001>
module attributes {stable_mosaic.version = 11 : i64} {
  func.func @_block_kernel(%arg0: i32, %arg1: memref<16x32xf32, #tpu.memory_space<vmem>>, %arg2: memref<32x128xf32, #tpu.memory_space<vmem>>, %arg3: memref<32x32xf32, #tpu.memory_space<vmem>>, %arg4: memref<32x64xf32, #tpu.memory_space<vmem>>, %arg5: memref<64x32xf32, #tpu.memory_space<vmem>>, %arg6: memref<7x128xf32, #tpu.memory_space<vmem>>, %arg7: memref<2x8x16xf32, #tpu.memory_space<vmem>>, %arg8: memref<16x32xf32, #tpu.memory_space<vmem>>, %arg9: memref<16x32xf32, #tpu.memory_space<vmem>>) attributes {dimension_semantics = [#tpu.dimension_semantics<parallel>], iteration_bounds = array<i64: 1>, scalar_prefetch = 0 : i64, scratch_operands = 1 : i64, tpu.core_type = #tpu.core_type<tc>, window_params = [{transform_indices = @transform_0, window_bounds = array<i64: 16, 32>}, {pipeline_mode = #tpu.pipeline_mode<synchronous>, transform_indices = @transform_1, window_bounds = array<i64: 32, 128>}, {pipeline_mode = #tpu.pipeline_mode<synchronous>, transform_indices = @transform_2, window_bounds = array<i64: 32, 32>}, {pipeline_mode = #tpu.pipeline_mode<synchronous>, transform_indices = @transform_3, window_bounds = array<i64: 32, 64>}, {pipeline_mode = #tpu.pipeline_mode<synchronous>, transform_indices = @transform_4, window_bounds = array<i64: 64, 32>}, {pipeline_mode = #tpu.pipeline_mode<synchronous>, transform_indices = @transform_5, window_bounds = array<i64: 7, 128>}, {pipeline_mode = #tpu.pipeline_mode<synchronous>, transform_indices = @transform_6, window_bounds = array<i64: 2, 8, 16>}, {transform_indices = @transform_7, window_bounds = array<i64: 16, 32>}]} {
    %c0 = arith.constant 0 : index
    %c0_0 = arith.constant 0 : index
    %0 = vector.load %arg1[%c0, %c0_0] : memref<16x32xf32, #tpu.memory_space<vmem>>, vector<16x32xf32>
    %c0_1 = arith.constant 0 : index
    %c0_2 = arith.constant 0 : index
    %1 = vector.load %arg6[%c0_1, %c0_2] : memref<7x128xf32, #tpu.memory_space<vmem>>, vector<7x128xf32>
    %2 = vector.extract_strided_slice %1 {offsets = [0, 0], sizes = [1, 128], strides = [1, 1]} : vector<7x128xf32> to vector<1x128xf32>
    %3 = vector.extract_strided_slice %1 {offsets = [1, 0], sizes = [1, 32], strides = [1, 1]} : vector<7x128xf32> to vector<1x32xf32>
    %4 = vector.extract_strided_slice %1 {offsets = [2, 0], sizes = [1, 64], strides = [1, 1]} : vector<7x128xf32> to vector<1x64xf32>
    %5 = vector.extract_strided_slice %1 {offsets = [3, 0], sizes = [1, 32], strides = [1, 1]} : vector<7x128xf32> to vector<1x32xf32>
    %6 = vector.extract_strided_slice %1 {offsets = [4, 0], sizes = [1, 16], strides = [1, 1]} : vector<7x128xf32> to vector<1x16xf32>
    %7 = vector.extract_strided_slice %1 {offsets = [5, 0], sizes = [1, 32], strides = [1, 1]} : vector<7x128xf32> to vector<1x32xf32>
    %8 = vector.extract_strided_slice %1 {offsets = [6, 0], sizes = [1, 32], strides = [1, 1]} : vector<7x128xf32> to vector<1x32xf32>
    %c0_3 = arith.constant 0 : index
    %c0_4 = arith.constant 0 : index
    %c0_5 = arith.constant 0 : index
    %9 = vector.load %arg7[%c0_3, %c0_4, %c0_5] : memref<2x8x16xf32, #tpu.memory_space<vmem>>, vector<1x8x16xf32>
    %10 = vector.shape_cast %9 : vector<1x8x16xf32> to vector<8x16xf32>
    %c1 = arith.constant 1 : index
    %c0_6 = arith.constant 0 : index
    %c0_7 = arith.constant 0 : index
    %11 = vector.load %arg7[%c1, %c0_6, %c0_7] : memref<2x8x16xf32, #tpu.memory_space<vmem>>, vector<1x8x16xf32>
    %12 = vector.shape_cast %11 : vector<1x8x16xf32> to vector<8x16xf32>
    %13 = tpu.concatenate %10, %10 in 0 : vector<8x16xf32>, vector<8x16xf32> -> vector<16x16xf32>
    %14 = tpu.concatenate %12, %12 in 0 : vector<8x16xf32>, vector<8x16xf32> -> vector<16x16xf32>
    %c0_8 = arith.constant 0 : index
    %c0_9 = arith.constant 0 : index
    %15 = vector.load %arg2[%c0_8, %c0_9] : memref<32x128xf32, #tpu.memory_space<vmem>>, vector<32x128xf32>
    %cst = arith.constant dense<0.000000e+00> : vector<16x128xf32>
    %16 = tpu.matmul %0, %15, %cst {dimension_numbers = #tpu.dot_dimension_numbers<[1], [0], [0], [1], [0, 0, 1, 1], [], []>} : vector<16x32xf32>, vector<32x128xf32>, vector<16x128xf32> -> vector<16x128xf32>
    %17 = vector.broadcast %2 : vector<1x128xf32> to vector<16x128xf32>
    %18 = arith.addf %16, %17 : vector<16x128xf32>
    %19 = vector.extract_strided_slice %18 {offsets = [0, 0], sizes = [16, 32], strides = [1, 1]} : vector<16x128xf32> to vector<16x32xf32>
    %20 = vector.extract_strided_slice %18 {offsets = [0, 32], sizes = [16, 32], strides = [1, 1]} : vector<16x128xf32> to vector<16x32xf32>
    %21 = vector.extract_strided_slice %18 {offsets = [0, 64], sizes = [16, 32], strides = [1, 1]} : vector<16x128xf32> to vector<16x32xf32>
    %22 = vector.extract_strided_slice %18 {offsets = [0, 96], sizes = [16, 32], strides = [1, 1]} : vector<16x128xf32> to vector<16x32xf32>
    %23 = tpu.iota {dimensions = array<i32: 0>} : vector<16x16xi32>
    %24 = tpu.iota {dimensions = array<i32: 1>} : vector<16x16xi32>
    %c0_i32 = arith.constant 0 : i32
    %25 = vector.broadcast %c0_i32 : i32 to vector<16x16xi32>
    %26 = arith.cmpi sge, %23, %25 : vector<16x16xi32>
    %c8_i32 = arith.constant 8 : i32
    %27 = vector.broadcast %c8_i32 : i32 to vector<16x16xi32>
    %28 = arith.cmpi slt, %23, %27 : vector<16x16xi32>
    %29 = arith.andi %26, %28 : vector<16x16xi1>
    %c0_i32_10 = arith.constant 0 : i32
    %30 = vector.broadcast %c0_i32_10 : i32 to vector<16x16xi32>
    %31 = arith.cmpi sge, %24, %30 : vector<16x16xi32>
    %32 = arith.andi %29, %31 : vector<16x16xi1>
    %c8_i32_11 = arith.constant 8 : i32
    %33 = vector.broadcast %c8_i32_11 : i32 to vector<16x16xi32>
    %34 = arith.cmpi slt, %24, %33 : vector<16x16xi32>
    %35 = arith.andi %32, %34 : vector<16x16xi1>
    %36 = arith.cmpi sge, %23, %24 : vector<16x16xi32>
    %37 = arith.andi %35, %36 : vector<16x16xi1>
    %c8_i32_12 = arith.constant 8 : i32
    %38 = vector.broadcast %c8_i32_12 : i32 to vector<16x16xi32>
    %39 = arith.cmpi sge, %23, %38 : vector<16x16xi32>
    %c16_i32 = arith.constant 16 : i32
    %40 = vector.broadcast %c16_i32 : i32 to vector<16x16xi32>
    %41 = arith.cmpi slt, %23, %40 : vector<16x16xi32>
    %42 = arith.andi %39, %41 : vector<16x16xi1>
    %c8_i32_13 = arith.constant 8 : i32
    %43 = vector.broadcast %c8_i32_13 : i32 to vector<16x16xi32>
    %44 = arith.cmpi sge, %24, %43 : vector<16x16xi32>
    %45 = arith.andi %42, %44 : vector<16x16xi1>
    %c16_i32_14 = arith.constant 16 : i32
    %46 = vector.broadcast %c16_i32_14 : i32 to vector<16x16xi32>
    %47 = arith.cmpi slt, %24, %46 : vector<16x16xi32>
    %48 = arith.andi %45, %47 : vector<16x16xi1>
    %49 = arith.cmpi sge, %23, %24 : vector<16x16xi32>
    %50 = arith.andi %48, %49 : vector<16x16xi1>
    %51 = arith.ori %37, %50 : vector<16x16xi1>
    %52 = arith.extui %51 : vector<16x16xi1> to vector<16x16xi32>
    %53 = arith.sitofp %52 : vector<16x16xi32> to vector<16x16xf32>
    %54 = arith.subi %23, %24 : vector<16x16xi32>
    %55 = arith.sitofp %54 : vector<16x16xi32> to vector<16x16xf32>
    %cst_15 = arith.constant 0.000000e+00 : f32
    %56 = vector.broadcast %cst_15 : f32 to vector<16x16xf32>
    %57 = arith.select %51, %55, %56 : vector<16x16xi1>, vector<16x16xf32>
    %58 = tpu.iota {dimensions = array<i32: 0>} : vector<8x1xi32>
    %c1_i32 = arith.constant 1 : i32
    %59 = vector.broadcast %c1_i32 : i32 to vector<8x1xi32>
    %60 = arith.addi %58, %59 : vector<8x1xi32>
    %61 = arith.sitofp %60 : vector<8x1xi32> to vector<8x1xf32>
    %62 = vector.extract_strided_slice %19 {offsets = [0, 0], sizes = [16, 16], strides = [1, 1]} : vector<16x32xf32> to vector<16x16xf32>
    %63 = vector.extract_strided_slice %20 {offsets = [0, 0], sizes = [16, 16], strides = [1, 1]} : vector<16x32xf32> to vector<16x16xf32>
    %64 = vector.extract_strided_slice %21 {offsets = [0, 0], sizes = [16, 16], strides = [1, 1]} : vector<16x32xf32> to vector<16x16xf32>
    %65 = arith.mulf %62, %13 : vector<16x16xf32>
    %66 = vector.extract_strided_slice %62 {offsets = [0, 8], sizes = [16, 8], strides = [1, 1]} : vector<16x16xf32> to vector<16x8xf32>
    %cst_16 = arith.constant 0.000000e+00 : f32
    %67 = vector.broadcast %cst_16 : f32 to vector<16x8xf32>
    %68 = arith.subf %67, %66 : vector<16x8xf32>
    %69 = vector.extract_strided_slice %62 {offsets = [0, 0], sizes = [16, 8], strides = [1, 1]} : vector<16x16xf32> to vector<16x8xf32>
    %70 = tpu.concatenate %68, %69 in 1 : vector<16x8xf32>, vector<16x8xf32> -> vector<16x16xf32>
    %71 = arith.mulf %70, %14 : vector<16x16xf32>
    %72 = arith.addf %65, %71 : vector<16x16xf32>
    %73 = arith.mulf %63, %13 : vector<16x16xf32>
    %74 = vector.extract_strided_slice %63 {offsets = [0, 8], sizes = [16, 8], strides = [1, 1]} : vector<16x16xf32> to vector<16x8xf32>
    %cst_17 = arith.constant 0.000000e+00 : f32
    %75 = vector.broadcast %cst_17 : f32 to vector<16x8xf32>
    %76 = arith.subf %75, %74 : vector<16x8xf32>
    %77 = vector.extract_strided_slice %63 {offsets = [0, 0], sizes = [16, 8], strides = [1, 1]} : vector<16x16xf32> to vector<16x8xf32>
    %78 = tpu.concatenate %76, %77 in 1 : vector<16x8xf32>, vector<16x8xf32> -> vector<16x16xf32>
    %79 = arith.mulf %78, %14 : vector<16x16xf32>
    %80 = arith.addf %73, %79 : vector<16x16xf32>
    %cst_18 = arith.constant -0.0317486972 : f32
    %81 = vector.broadcast %cst_18 : f32 to vector<8x1xf32>
    %82 = arith.mulf %81, %61 : vector<8x1xf32>
    %83 = math.exp %82 : vector<8x1xf32>
    %cst_19 = arith.constant 1.000000e+00 : f32
    %84 = vector.broadcast %cst_19 : f32 to vector<8x1xf32>
    %85 = arith.subf %84, %83 : vector<8x1xf32>
    %cst_20 = arith.constant 3.200000e+01 : f32
    %86 = vector.broadcast %cst_20 : f32 to vector<8x1xf32>
    %87 = arith.mulf %85, %86 : vector<8x1xf32>
    %88 = math.rsqrt %87 : vector<8x1xf32>
    %89 = tpu.concatenate %88, %88 in 0 : vector<8x1xf32>, vector<8x1xf32> -> vector<16x1xf32>
    %cst_21 = arith.constant -0.0317486972 : f32
    %90 = vector.broadcast %cst_21 : f32 to vector<16x16xf32>
    %91 = arith.mulf %90, %57 : vector<16x16xf32>
    %92 = math.exp %91 : vector<16x16xf32>
    %93 = arith.mulf %92, %53 : vector<16x16xf32>
    %94 = vector.broadcast %89 : vector<16x1xf32> to vector<16x16xf32>
    %95 = arith.mulf %93, %94 : vector<16x16xf32>
    %cst_22 = arith.constant dense<0.000000e+00> : vector<16x16xf32>
    %96 = tpu.matmul %72, %80, %cst_22 {dimension_numbers = #tpu.dot_dimension_numbers<[1], [1], [0], [0], [0, 0, 1, 0], [], []>} : vector<16x16xf32>, vector<16x16xf32>, vector<16x16xf32> -> vector<16x16xf32>
    %97 = arith.mulf %96, %95 : vector<16x16xf32>
    %98 = math.absf %97 : vector<16x16xf32>
    %cst_23 = arith.constant dense<0.000000e+00> : vector<16xf32>
    %99 = vector.multi_reduction <add>, %98, %cst_23 [1] : vector<16x16xf32> to vector<16xf32>
    %100 = vector.shape_cast %99 : vector<16xf32> to vector<16x1xf32>
    %cst_24 = arith.constant 1.000000e+00 : f32
    %cst_25 = arith.constant 5.000000e+04 : f32
    %101 = vector.broadcast %cst_24 : f32 to vector<16x1xf32>
    %102 = arith.maximumf %101, %100 : vector<16x1xf32>
    %103 = vector.broadcast %cst_25 : f32 to vector<16x1xf32>
    %104 = arith.minimumf %103, %102 : vector<16x1xf32>
    %105 = tpu.reciprocal %104 {approx = true} : vector<16x1xf32> -> vector<16x1xf32>
    %106 = vector.broadcast %105 : vector<16x1xf32> to vector<16x16xf32>
    %107 = arith.mulf %97, %106 : vector<16x16xf32>
    %cst_26 = arith.constant dense<0.000000e+00> : vector<16x16xf32>
    %108 = tpu.matmul %107, %64, %cst_26 {dimension_numbers = #tpu.dot_dimension_numbers<[1], [0], [0], [1], [0, 0, 1, 1], [], []>} : vector<16x16xf32>, vector<16x16xf32>, vector<16x16xf32> -> vector<16x16xf32>
    %109 = arith.mulf %108, %108 : vector<16x16xf32>
    %cst_27 = arith.constant dense<0.000000e+00> : vector<16xf32>
    %110 = vector.multi_reduction <add>, %109, %cst_27 [1] : vector<16x16xf32> to vector<16xf32>
    %111 = vector.shape_cast %110 : vector<16xf32> to vector<16x1xf32>
    %cst_28 = arith.constant 1.600000e+01 : f32
    %112 = vector.broadcast %cst_28 : f32 to vector<16x1xf32>
    %113 = arith.divf %111, %112 : vector<16x1xf32>
    %cst_29 = arith.constant 9.99999993E-9 : f32
    %114 = vector.broadcast %cst_29 : f32 to vector<16x1xf32>
    %115 = arith.addf %113, %114 : vector<16x1xf32>
    %116 = math.rsqrt %115 : vector<16x1xf32>
    %117 = vector.broadcast %116 : vector<16x1xf32> to vector<16x16xf32>
    %118 = arith.mulf %108, %117 : vector<16x16xf32>
    %119 = vector.broadcast %6 : vector<1x16xf32> to vector<16x16xf32>
    %120 = arith.mulf %118, %119 : vector<16x16xf32>
    %c0_30 = arith.constant 0 : index
    %c0_31 = arith.constant 0 : index
    %121 = vector.load %arg9[%c0_30, %c0_31] : memref<16x32xf32, #tpu.memory_space<vmem>>, vector<16x16xf32>
    tpu.vector_store %arg9[%c0_30, %c0_31], %120 {strides = array<i32>} : memref<16x32xf32, #tpu.memory_space<vmem>>, vector<16x16xf32>,
    %122 = vector.extract_strided_slice %19 {offsets = [0, 16], sizes = [16, 16], strides = [1, 1]} : vector<16x32xf32> to vector<16x16xf32>
    %123 = vector.extract_strided_slice %20 {offsets = [0, 16], sizes = [16, 16], strides = [1, 1]} : vector<16x32xf32> to vector<16x16xf32>
    %124 = vector.extract_strided_slice %21 {offsets = [0, 16], sizes = [16, 16], strides = [1, 1]} : vector<16x32xf32> to vector<16x16xf32>
    %125 = arith.mulf %122, %13 : vector<16x16xf32>
    %126 = vector.extract_strided_slice %122 {offsets = [0, 8], sizes = [16, 8], strides = [1, 1]} : vector<16x16xf32> to vector<16x8xf32>
    %cst_32 = arith.constant 0.000000e+00 : f32
    %127 = vector.broadcast %cst_32 : f32 to vector<16x8xf32>
    %128 = arith.subf %127, %126 : vector<16x8xf32>
    %129 = vector.extract_strided_slice %122 {offsets = [0, 0], sizes = [16, 8], strides = [1, 1]} : vector<16x16xf32> to vector<16x8xf32>
    %130 = tpu.concatenate %128, %129 in 1 : vector<16x8xf32>, vector<16x8xf32> -> vector<16x16xf32>
    %131 = arith.mulf %130, %14 : vector<16x16xf32>
    %132 = arith.addf %125, %131 : vector<16x16xf32>
    %133 = arith.mulf %123, %13 : vector<16x16xf32>
    %134 = vector.extract_strided_slice %123 {offsets = [0, 8], sizes = [16, 8], strides = [1, 1]} : vector<16x16xf32> to vector<16x8xf32>
    %cst_33 = arith.constant 0.000000e+00 : f32
    %135 = vector.broadcast %cst_33 : f32 to vector<16x8xf32>
    %136 = arith.subf %135, %134 : vector<16x8xf32>
    %137 = vector.extract_strided_slice %123 {offsets = [0, 0], sizes = [16, 8], strides = [1, 1]} : vector<16x16xf32> to vector<16x8xf32>
    %138 = tpu.concatenate %136, %137 in 1 : vector<16x8xf32>, vector<16x8xf32> -> vector<16x16xf32>
    %139 = arith.mulf %138, %14 : vector<16x16xf32>
    %140 = arith.addf %133, %139 : vector<16x16xf32>
    %cst_34 = arith.constant -0.0157483574 : f32
    %141 = vector.broadcast %cst_34 : f32 to vector<8x1xf32>
    %142 = arith.mulf %141, %61 : vector<8x1xf32>
    %143 = math.exp %142 : vector<8x1xf32>
    %cst_35 = arith.constant 1.000000e+00 : f32
    %144 = vector.broadcast %cst_35 : f32 to vector<8x1xf32>
    %145 = arith.subf %144, %143 : vector<8x1xf32>
    %cst_36 = arith.constant 6.400000e+01 : f32
    %146 = vector.broadcast %cst_36 : f32 to vector<8x1xf32>
    %147 = arith.mulf %145, %146 : vector<8x1xf32>
    %148 = math.rsqrt %147 : vector<8x1xf32>
    %149 = tpu.concatenate %148, %148 in 0 : vector<8x1xf32>, vector<8x1xf32> -> vector<16x1xf32>
    %cst_37 = arith.constant -0.0157483574 : f32
    %150 = vector.broadcast %cst_37 : f32 to vector<16x16xf32>
    %151 = arith.mulf %150, %57 : vector<16x16xf32>
    %152 = math.exp %151 : vector<16x16xf32>
    %153 = arith.mulf %152, %53 : vector<16x16xf32>
    %154 = vector.broadcast %149 : vector<16x1xf32> to vector<16x16xf32>
    %155 = arith.mulf %153, %154 : vector<16x16xf32>
    %cst_38 = arith.constant dense<0.000000e+00> : vector<16x16xf32>
    %156 = tpu.matmul %132, %140, %cst_38 {dimension_numbers = #tpu.dot_dimension_numbers<[1], [1], [0], [0], [0, 0, 1, 0], [], []>} : vector<16x16xf32>, vector<16x16xf32>, vector<16x16xf32> -> vector<16x16xf32>
    %157 = arith.mulf %156, %155 : vector<16x16xf32>
    %158 = math.absf %157 : vector<16x16xf32>
    %cst_39 = arith.constant dense<0.000000e+00> : vector<16xf32>
    %159 = vector.multi_reduction <add>, %158, %cst_39 [1] : vector<16x16xf32> to vector<16xf32>
    %160 = vector.shape_cast %159 : vector<16xf32> to vector<16x1xf32>
    %cst_40 = arith.constant 1.000000e+00 : f32
    %cst_41 = arith.constant 5.000000e+04 : f32
    %161 = vector.broadcast %cst_40 : f32 to vector<16x1xf32>
    %162 = arith.maximumf %161, %160 : vector<16x1xf32>
    %163 = vector.broadcast %cst_41 : f32 to vector<16x1xf32>
    %164 = arith.minimumf %163, %162 : vector<16x1xf32>
    %165 = tpu.reciprocal %164 {approx = true} : vector<16x1xf32> -> vector<16x1xf32>
    %166 = vector.broadcast %165 : vector<16x1xf32> to vector<16x16xf32>
    %167 = arith.mulf %157, %166 : vector<16x16xf32>
    %cst_42 = arith.constant dense<0.000000e+00> : vector<16x16xf32>
    %168 = tpu.matmul %167, %124, %cst_42 {dimension_numbers = #tpu.dot_dimension_numbers<[1], [0], [0], [1], [0, 0, 1, 1], [], []>} : vector<16x16xf32>, vector<16x16xf32>, vector<16x16xf32> -> vector<16x16xf32>
    %169 = arith.mulf %168, %168 : vector<16x16xf32>
    %cst_43 = arith.constant dense<0.000000e+00> : vector<16xf32>
    %170 = vector.multi_reduction <add>, %169, %cst_43 [1] : vector<16x16xf32> to vector<16xf32>
    %171 = vector.shape_cast %170 : vector<16xf32> to vector<16x1xf32>
    %cst_44 = arith.constant 1.600000e+01 : f32
    %172 = vector.broadcast %cst_44 : f32 to vector<16x1xf32>
    %173 = arith.divf %171, %172 : vector<16x1xf32>
    %cst_45 = arith.constant 9.99999993E-9 : f32
    %174 = vector.broadcast %cst_45 : f32 to vector<16x1xf32>
    %175 = arith.addf %173, %174 : vector<16x1xf32>
    %176 = math.rsqrt %175 : vector<16x1xf32>
    %177 = vector.broadcast %176 : vector<16x1xf32> to vector<16x16xf32>
    %178 = arith.mulf %168, %177 : vector<16x16xf32>
    %179 = vector.broadcast %6 : vector<1x16xf32> to vector<16x16xf32>
    %180 = arith.mulf %178, %179 : vector<16x16xf32>
    %c0_46 = arith.constant 0 : index
    %c16 = arith.constant 16 : index
    %181 = vector.load %arg9[%c0_46, %c16] : memref<16x32xf32, #tpu.memory_space<vmem>>, vector<16x16xf32>
    tpu.vector_store %arg9[%c0_46, %c16], %180 {strides = array<i32>} : memref<16x32xf32, #tpu.memory_space<vmem>>, vector<16x16xf32>,
    %c0_47 = arith.constant 0 : index
    %c0_48 = arith.constant 0 : index
    %182 = vector.load %arg9[%c0_47, %c0_48] : memref<16x32xf32, #tpu.memory_space<vmem>>, vector<16x32xf32>
    %183 = arith.negf %22 : vector<16x32xf32>
    %184 = math.exp %183 : vector<16x32xf32>
    %cst_49 = arith.constant 1.000000e+00 : f32
    %185 = vector.broadcast %cst_49 : f32 to vector<16x32xf32>
    %186 = arith.addf %185, %184 : vector<16x32xf32>
    %187 = arith.divf %185, %186 : vector<16x32xf32>
    %188 = arith.mulf %22, %187 : vector<16x32xf32>
    %189 = arith.mulf %188, %182 : vector<16x32xf32>
    %c0_50 = arith.constant 0 : index
    %c0_51 = arith.constant 0 : index
    %190 = vector.load %arg3[%c0_50, %c0_51] : memref<32x32xf32, #tpu.memory_space<vmem>>, vector<32x32xf32>
    %cst_52 = arith.constant dense<0.000000e+00> : vector<16x32xf32>
    %191 = tpu.matmul %189, %190, %cst_52 {dimension_numbers = #tpu.dot_dimension_numbers<[1], [0], [0], [1], [0, 0, 1, 1], [], []>} : vector<16x32xf32>, vector<32x32xf32>, vector<16x32xf32> -> vector<16x32xf32>
    %192 = vector.broadcast %3 : vector<1x32xf32> to vector<16x32xf32>
    %193 = arith.addf %191, %192 : vector<16x32xf32>
    %194 = arith.mulf %193, %193 : vector<16x32xf32>
    %cst_53 = arith.constant dense<0.000000e+00> : vector<16xf32>
    %195 = vector.multi_reduction <add>, %194, %cst_53 [1] : vector<16x32xf32> to vector<16xf32>
    %196 = vector.shape_cast %195 : vector<16xf32> to vector<16x1xf32>
    %cst_54 = arith.constant 3.200000e+01 : f32
    %197 = vector.broadcast %cst_54 : f32 to vector<16x1xf32>
    %198 = arith.divf %196, %197 : vector<16x1xf32>
    %cst_55 = arith.constant 9.99999993E-9 : f32
    %199 = vector.broadcast %cst_55 : f32 to vector<16x1xf32>
    %200 = arith.addf %198, %199 : vector<16x1xf32>
    %201 = math.rsqrt %200 : vector<16x1xf32>
    %202 = vector.broadcast %201 : vector<16x1xf32> to vector<16x32xf32>
    %203 = arith.mulf %193, %202 : vector<16x32xf32>
    %204 = vector.broadcast %7 : vector<1x32xf32> to vector<16x32xf32>
    %205 = arith.mulf %203, %204 : vector<16x32xf32>
    %206 = arith.addf %0, %205 : vector<16x32xf32>
    %c0_56 = arith.constant 0 : index
    %c0_57 = arith.constant 0 : index
    %207 = vector.load %arg4[%c0_56, %c0_57] : memref<32x64xf32, #tpu.memory_space<vmem>>, vector<32x64xf32>
    %cst_58 = arith.constant dense<0.000000e+00> : vector<16x64xf32>
    %208 = tpu.matmul %206, %207, %cst_58 {dimension_numbers = #tpu.dot_dimension_numbers<[1], [0], [0], [1], [0, 0, 1, 1], [], []>} : vector<16x32xf32>, vector<32x64xf32>, vector<16x64xf32> -> vector<16x64xf32>
    %209 = vector.broadcast %4 : vector<1x64xf32> to vector<16x64xf32>
    %210 = arith.addf %208, %209 : vector<16x64xf32>
    %cst_59 = arith.constant 5.000000e-01 : f32
    %211 = vector.broadcast %cst_59 : f32 to vector<16x64xf32>
    %212 = arith.mulf %211, %210 : vector<16x64xf32>
    %cst_60 = arith.constant 0.707106769 : f32
    %213 = vector.broadcast %cst_60 : f32 to vector<16x64xf32>
    %214 = arith.mulf %210, %213 : vector<16x64xf32>
    %cst_61 = arith.constant 0.000000e+00 : f32
    %215 = vector.broadcast %cst_61 : f32 to vector<16x64xf32>
    %216 = arith.cmpf oge, %214, %215 : vector<16x64xf32>
    %cst_62 = arith.constant 1.000000e+00 : f32
    %cst_63 = arith.constant -1.000000e+00 : f32
    %217 = vector.broadcast %cst_62 : f32 to vector<16x64xf32>
    %218 = vector.broadcast %cst_63 : f32 to vector<16x64xf32>
    %219 = arith.select %216, %217, %218 : vector<16x64xi1>, vector<16x64xf32>
    %220 = math.absf %214 : vector<16x64xf32>
    %cst_64 = arith.constant 0.327591091 : f32
    %221 = vector.broadcast %cst_64 : f32 to vector<16x64xf32>
    %222 = arith.mulf %221, %220 : vector<16x64xf32>
    %cst_65 = arith.constant 1.000000e+00 : f32
    %223 = vector.broadcast %cst_65 : f32 to vector<16x64xf32>
    %224 = arith.addf %223, %222 : vector<16x64xf32>
    %cst_66 = arith.constant 1.000000e+00 : f32
    %225 = vector.broadcast %cst_66 : f32 to vector<16x64xf32>
    %226 = arith.divf %225, %224 : vector<16x64xf32>
    %cst_67 = arith.constant 1.06140542 : f32
    %227 = vector.broadcast %cst_67 : f32 to vector<16x64xf32>
    %228 = arith.mulf %227, %226 : vector<16x64xf32>
    %cst_68 = arith.constant -1.45315206 : f32
    %229 = vector.broadcast %cst_68 : f32 to vector<16x64xf32>
    %230 = arith.addf %228, %229 : vector<16x64xf32>
    %231 = arith.mulf %230, %226 : vector<16x64xf32>
    %cst_69 = arith.constant 1.42141378 : f32
    %232 = vector.broadcast %cst_69 : f32 to vector<16x64xf32>
    %233 = arith.addf %231, %232 : vector<16x64xf32>
    %234 = arith.mulf %233, %226 : vector<16x64xf32>
    %cst_70 = arith.constant -0.284496725 : f32
    %235 = vector.broadcast %cst_70 : f32 to vector<16x64xf32>
    %236 = arith.addf %234, %235 : vector<16x64xf32>
    %237 = arith.mulf %236, %226 : vector<16x64xf32>
    %cst_71 = arith.constant 0.254829586 : f32
    %238 = vector.broadcast %cst_71 : f32 to vector<16x64xf32>
    %239 = arith.addf %237, %238 : vector<16x64xf32>
    %240 = arith.mulf %239, %226 : vector<16x64xf32>
    %cst_72 = arith.constant 0.000000e+00 : f32
    %241 = vector.broadcast %cst_72 : f32 to vector<16x64xf32>
    %242 = arith.subf %241, %220 : vector<16x64xf32>
    %243 = arith.mulf %242, %220 : vector<16x64xf32>
    %244 = math.exp %243 : vector<16x64xf32>
    %245 = arith.mulf %240, %244 : vector<16x64xf32>
    %cst_73 = arith.constant 1.000000e+00 : f32
    %246 = vector.broadcast %cst_73 : f32 to vector<16x64xf32>
    %247 = arith.subf %246, %245 : vector<16x64xf32>
    %248 = arith.mulf %219, %247 : vector<16x64xf32>
    %cst_74 = arith.constant 1.000000e+00 : f32
    %249 = vector.broadcast %cst_74 : f32 to vector<16x64xf32>
    %250 = arith.addf %249, %248 : vector<16x64xf32>
    %251 = arith.mulf %212, %250 : vector<16x64xf32>
    %c0_75 = arith.constant 0 : index
    %c0_76 = arith.constant 0 : index
    %252 = vector.load %arg5[%c0_75, %c0_76] : memref<64x32xf32, #tpu.memory_space<vmem>>, vector<64x32xf32>
    %cst_77 = arith.constant dense<0.000000e+00> : vector<16x32xf32>
    %253 = tpu.matmul %251, %252, %cst_77 {dimension_numbers = #tpu.dot_dimension_numbers<[1], [0], [0], [1], [0, 0, 1, 1], [], []>} : vector<16x64xf32>, vector<64x32xf32>, vector<16x32xf32> -> vector<16x32xf32>
    %254 = vector.broadcast %5 : vector<1x32xf32> to vector<16x32xf32>
    %255 = arith.addf %253, %254 : vector<16x32xf32>
    %256 = arith.mulf %255, %255 : vector<16x32xf32>
    %cst_78 = arith.constant dense<0.000000e+00> : vector<16xf32>
    %257 = vector.multi_reduction <add>, %256, %cst_78 [1] : vector<16x32xf32> to vector<16xf32>
    %258 = vector.shape_cast %257 : vector<16xf32> to vector<16x1xf32>
    %cst_79 = arith.constant 3.200000e+01 : f32
    %259 = vector.broadcast %cst_79 : f32 to vector<16x1xf32>
    %260 = arith.divf %258, %259 : vector<16x1xf32>
    %cst_80 = arith.constant 9.99999993E-9 : f32
    %261 = vector.broadcast %cst_80 : f32 to vector<16x1xf32>
    %262 = arith.addf %260, %261 : vector<16x1xf32>
    %263 = math.rsqrt %262 : vector<16x1xf32>
    %264 = vector.broadcast %263 : vector<16x1xf32> to vector<16x32xf32>
    %265 = arith.mulf %255, %264 : vector<16x32xf32>
    %266 = vector.broadcast %8 : vector<1x32xf32> to vector<16x32xf32>
    %267 = arith.mulf %265, %266 : vector<16x32xf32>
    %268 = arith.addf %206, %267 : vector<16x32xf32>
    %c0_81 = arith.constant 0 : index
    %c0_82 = arith.constant 0 : index
    %269 = vector.load %arg8[%c0_81, %c0_82] : memref<16x32xf32, #tpu.memory_space<vmem>>, vector<16x32xf32>
    tpu.vector_store %arg8[%c0_81, %c0_82], %268 {strides = array<i32>} : memref<16x32xf32, #tpu.memory_space<vmem>>, vector<16x32xf32>,
    return
  }
  func.func @transform_0(%arg0: i32) -> (i32, i32) {
    %c0_i32 = arith.constant 0 : i32
    %c0_i32_0 = arith.constant 0 : i32
    return %arg0, %c0_i32 : i32, i32
  }
  func.func @transform_1(%arg0: i32) -> (i32, i32) {
    %c0_i32 = arith.constant 0 : i32
    %c0_i32_0 = arith.constant 0 : i32
    %c0_i32_1 = arith.constant 0 : i32
    return %c0_i32, %c0_i32_0 : i32, i32
  }
  func.func @transform_2(%arg0: i32) -> (i32, i32) {
    %c0_i32 = arith.constant 0 : i32
    %c0_i32_0 = arith.constant 0 : i32
    %c0_i32_1 = arith.constant 0 : i32
    return %c0_i32, %c0_i32_0 : i32, i32
  }
  func.func @transform_3(%arg0: i32) -> (i32, i32) {
    %c0_i32 = arith.constant 0 : i32
    %c0_i32_0 = arith.constant 0 : i32
    %c0_i32_1 = arith.constant 0 : i32
    return %c0_i32, %c0_i32_0 : i32, i32
  }
  func.func @transform_4(%arg0: i32) -> (i32, i32) {
    %c0_i32 = arith.constant 0 : i32
    %c0_i32_0 = arith.constant 0 : i32
    %c0_i32_1 = arith.constant 0 : i32
    return %c0_i32, %c0_i32_0 : i32, i32
  }
  func.func @transform_5(%arg0: i32) -> (i32, i32) {
    %c0_i32 = arith.constant 0 : i32
    %c0_i32_0 = arith.constant 0 : i32
    %c0_i32_1 = arith.constant 0 : i32
    return %c0_i32, %c0_i32_0 : i32, i32
  }
  func.func @transform_6(%arg0: i32) -> (i32, i32, i32) {
    %c0_i32 = arith.constant 0 : i32
    %c0_i32_0 = arith.constant 0 : i32
    %c0_i32_1 = arith.constant 0 : i32
    %c0_i32_2 = arith.constant 0 : i32
    return %c0_i32, %c0_i32_0, %c0_i32_1 : i32, i32, i32
  }
  func.func @transform_7(%arg0: i32) -> (i32, i32) {
    %c0_i32 = arith.constant 0 : i32
    %c0_i32_0 = arith.constant 0 : i32
    return %arg0, %c0_i32 : i32, i32
  }
}

</mosaic_0001>

<bundles_post_ra>
// kernel: tpu_custom_call.1
= control target key start
LH: loop header
LB: loop body
LE: loop exit
PB: predicated region body
PF: predicated region fallthrough
CT: control target
= control target key end

     0   :  { %12 = vsyncpa [#allocation4], 0  ;;  %s1958_s0 = inlined_call_operand.hbm [shape: f32[16,32], index: 0, kind: input, shape index: {}]   ;;  %s1959_s1 = inlined_call_operand.vmem [shape: f32[32,128], index: 1, kind: input, shape index: {}]   ;;  %s1960_s2 = inlined_call_operand.vmem [shape: f32[32,32], index: 2, kind: input, shape index: {}]   ;;  %s1961_s3 = inlined_call_operand.vmem [shape: f32[32,64], index: 3, kind: input, shape index: {}]   ;;  %s1962_s4 = inlined_call_operand.vmem [shape: f32[64,32], index: 4, kind: input, shape index: {}]   ;;  %s1963_s5 = inlined_call_operand.hbm [shape: f32[7,128], index: 5, kind: input, shape index: {}]   ;;  %s1964_s6 = inlined_call_operand.vmem [shape: f32[2,8,16], index: 6, kind: input, shape index: {}]   ;;  %s1965_s7 = inlined_call_operand.hbm [shape: f32[16,32], index: 7, kind: output, shape index: {}]  }
   0x1   :  { %13 = vsyncpa [#allocation7], 0 }
   0x2   :  { %14 = vsyncpa [#allocation5], 0  ;;  %s1615_s24 = smov [#allocation3]   ;;  %s1543_s28 = scalar_lea.hbm %s1958_s0, 256 }
   0x3   :  { %s20_s25 = sshll.u32 %s1615_s24, 4  ;;  %p1544_p0 = scmp.ne.s32.totalorder %s1958_s0, %s1543_s28  ;;  %s21_s25 = int_to_ptr.vmem [resolvable:$true] %s20_s25 }
   0x4   :  { %p1547_p1 = scmp.lt.u32.totalorder %s1543_s28, %s1958_s0 }
   0x6   :  { %p1549_p2 = pnand %p1547_p1, %p1544_p0 }
   0x8   :  { %1552 = shalt.err (!%p1549_p2)
}
   0x9   :  { %s1553_s10 = scalar_lea.vmem %s21_s25, 256  ;;  %p1558_p4 = scmp.lt.s32.totalorder %s21_s25, %s21_s25 }
   0xa   :  { %p1554_p3 = scmp.ne.s32.totalorder %s21_s25, %s1553_s10  ;;  %p1559_p5 = scmp.lt.s32.totalorder %s1553_s10, %s1553_s10 }
   0xc   :  { %p1560_p6 = por %p1559_p5, %p1558_p4 }
   0xe   :  { %p1561_p7 = pnand %p1560_p6, %p1554_p3 }
  0x10   :  { %1564 = shalt.err (!%p1561_p7)
}
  0x11   :  { %s1616_s11 = smov 128   ;;  %s1617_s12 = smov 8  }
  0x12   :  { %26 = dma.hbm_to_vmem [thread:$0]  %s1958_s0, 256, %s21_s25, [#allocation4], %s1616_s11, %s1616_s11, %s1617_s12  }
  0x13   :  { %s1618_s15 = smov [#allocation6]   ;;  %s1565_s19 = scalar_lea.hbm %s1963_s5, 128 }
  0x14   :  { %s41_s16 = sshll.u32 %s1618_s15, 4  ;;  %p1566_p8 = scmp.ne.s32.totalorder %s1963_s5, %s1565_s19  ;;  %s42_s16 = int_to_ptr.vmem [resolvable:$true] %s41_s16 }
  0x15   :  { %p1569_p9 = scmp.lt.u32.totalorder %s1565_s19, %s1963_s5 }
  0x17   :  { %p1571_p10 = pnand %p1569_p9, %p1566_p8 }
  0x19   :  { %1574 = shalt.err (!%p1571_p10)
}
  0x1a   :  { %s1575_s24 = scalar_lea.vmem %s42_s16, 128  ;;  %p1580_p12 = scmp.lt.s32.totalorder %s42_s16, %s42_s16 }
  0x1b   :  { %p1576_p11 = scmp.ne.s32.totalorder %s42_s16, %s1575_s24  ;;  %p1581_p13 = scmp.lt.s32.totalorder %s1575_s24, %s1575_s24 }
  0x1d   :  { %p1582_p0 = por %p1581_p13, %p1580_p12 }
  0x1f   :  { %p1583_p1 = pnand %p1582_p0, %p1576_p11 }
  0x21   :  { %1586 = shalt.err (!%p1583_p1)
}
  0x22   :  { %44 = dma.hbm_to_vmem [thread:$0]  %s1963_s5, 128, %s42_s16, [#allocation7]  }
  0x23   :  { %1609 = dma.done.wait [#allocation4], 256  }
  0x24   :  { %1610 = vsyncadd [#allocation4], 4294967040 }
  0x25   :  { %1611 = dma.done.wait [#allocation7], 128  }
  0x26   :  { %1612 = vsyncadd [#allocation7], 4294967168  ;;  %vm67_vm0 = vcmask 261120   ;;  %v59_v0 = vld [vmem:[%s1959_s1] sm:$0xff]  ;;  %v60_v1 = vld [vmem:[%s1959_s1 + $0x8] sm:$0xff]  ;;  %v63_v8 = vlaneseq  ;;  %s1620_s10 = smov 88  }
  0x27   :  { %v61_v2 = vld [vmem:[%s1959_s1 + $0x10] sm:$0xff]  ;;  %v1386_v3 = vpack.c.bf16 %v60_v1, %v59_v0  ;;  %v62_v4 = vld [vmem:[%s1959_s1 + $0x18] sm:$0xff]  ;;  %v1725_v11 = vld [vmem:[#allocation6] sm:$0x7f]  ;;  %s1619_s1 = smov 104   ;;  %s1621_s13 = smov 72  }
  0x28   :  { %v1713_v5 = vld [vmem:[#allocation3] sm:$0xff]  ;;  %v1390_v6 = vpack.c.bf16 %v62_v4, %v61_v2  ;;  %v1717_v7 = vld [vmem:[#allocation3 + $0x8] sm:$0xff]  ;;  %v1722_v9 = vshrl.u32 %v63_v8, 7  ;;  %s1622_s14 = smov 120   ;;  %v1745_v19 = vld [vmem:[%s1964_s6] sm:$0xff]  ;;  %s1623_s17 = smov 32  }
  0x29   :  { %1314 = vmatprep.mubr.msk.f32.mxu1 %vm67_vm0, %v1713_v5  ;;  %1387 = vmatprep.subr.bf16.mxu1 %v1386_v3  ;;  %vm218_vm1 = vcmask 64512   ;;  %v1752_v21 = vld [vmem:[%s1964_s6 + $0x8] sm:$0xff]  ;;  %s1624_s6 = smov 48   ;;  %s1625_s20 = smov 16   ;;  %v1628_v1 = vmov 0   ;;  %vm284_vm2 = vcmask 130048  }
  0x2a   :  { %1389 = vmatpush3.bf16.msra.mxu1 %v1386_v3  ;;  %v65_v10 = vsub.s32 0, %v1722_v9  ;;  %s1626_s21 = smov 96   ;;  %s1627_s22 = smov 80   ;;  %v196_v63 = vadd.s32 1, %v1722_v9  ;;  %1475 = vset.pattern.permute.xlu1 %v1628_v1  ;;  %vm1792_vm3 = vmpackc.low %vm284_vm2, %vm284_vm2  ;;  %vm809_vm12 = vcmask 261248   ;;  %vm1111_vm15 = vcmask 523264  }
  0x2b   :  { %1391 = vmatprep.subr.bf16.mxu1 %v1390_v6  ;;  %1476 = vset.pattern.permute.xlu0 %v1628_v1  ;;  %s1629_s23 = smov 112   ;;  %s1631_s24 = smov 64  }
  0x2c   :  { %v66_v12 = vrot.slane %v1725_v11, %v65_v10  ;;  %v197_v4 = vcvt.s32.f32 %v196_v63 }
  0x2e   :  { %1393 = vmatpush3.bf16.msra.mxu1 %v1390_v6 }
  0x31   :  { %1315 = vmatmul.mubr.msk.f32.vlgmr.msra.gmra.mrb[0].mxu1 %vm67_vm0, %v1717_v7 }
 0x104   :  { %v1316_v13 = vpop.f32.mrb[0].mxu1 }
 0x105   :  { %v1728_v14 = vadd.f32 %v1316_v13, %v66_v12  ;;  %v140_v15 = vpop.f32.mrb[1].mxu1  ;;  %v562_v13 = vmul.f32 -0.015748357, %v197_v4 }
 0x106   :  { %v1730_v16 = vadd.f32 %v140_v15, %v66_v12  ;;  %v257_v12 = vmul.f32 -0.031748697, %v197_v4 }
 0x107   :  { %239 = vrot.lane.b32.xlu1 %v1728_v14, %s1619_s1  ;;  %v201_v17 = vsub.f32 0.0, %v1728_v14 }
 0x108   :  { %v200_v18 = vsub.f32 0.0, %v1730_v16  ;;  %v258_v15 = vmul.f32 1.442695, %v257_v12 }
 0x109   :  { %233 = vrot.lane.b32.xlu0 %v201_v17, %s1620_s10 }
 0x10a   :  { %1487 = vpow2.f32 %v258_v15 }
 0x10b   :  { %237 = vrot.lane.b32.xlu1 %v1730_v16, %s1619_s1 }
 0x10d   :  { %231 = vrot.lane.b32.xlu0 %v200_v18, %s1620_s10 }
 0x10f   :  { %538 = vrot.lane.b32.xlu1 %v201_v17, %s1621_s13 }
 0x111   :  { %536 = vrot.lane.b32.xlu0 %v200_v18, %s1621_s13 }
 0x113   :  { %544 = vrot.lane.b32.xlu1 %v1728_v14, %s1620_s10 }
 0x115   :  { %542 = vrot.lane.b32.xlu0 %v1730_v16, %s1620_s10 }
 0x117   :  { %511 = vrot.lane.b32.xlu1 %v1730_v16, %s1622_s14 }
 0x119   :  { %505 = vrot.lane.b32.xlu0 %v200_v18, %s1619_s1 }
 0x11b   :  { %513 = vrot.lane.b32.xlu1 %v1728_v14, %s1622_s14 }
 0x11d   :  { %507 = vrot.lane.b32.xlu0 %v201_v17, %s1619_s1 }
 0x121   :  { %226 = vrot.lane.b32.xlu0 %v1745_v19, %s1623_s17 }
 0x179   :  { %v240_v20 = vpop.permute.xlu1 %239 }
 0x17b   :  { %v234_v22 = vpop.permute.xlu0 %233 }
 0x17c   :  { %v244_v23 = vsel %vm218_vm1, %v234_v22, %v240_v20 }
 0x17d   :  { %v246_v24 = vmul.f32 %v1752_v21, %v244_v23  ;;  %v238_v25 = vpop.permute.xlu1 %237 }
 0x17f   :  { %251 = vrot.lane.b32.xlu0 %v246_v24, %s1623_s17  ;;  %v232_v26 = vpop.permute.xlu0 %231 }
 0x180   :  { %v243_v27 = vsel %vm218_vm1, %v232_v26, %v238_v25 }
 0x181   :  { %v245_v28 = vmul.f32 %v1752_v21, %v243_v27  ;;  %v539_v29 = vpop.permute.xlu1 %538 }
 0x183   :  { %249 = vrot.lane.b32.xlu1 %v245_v28, %s1623_s17  ;;  %v537_v30 = vpop.permute.xlu0 %536 }
 0x185   :  { %v545_v31 = vpop.permute.xlu1 %544 }
 0x186   :  { %v549_v32 = vsel %vm218_vm1, %v539_v29, %v545_v31 }
 0x187   :  { %531 = vrot.lane.b32.xlu1 %v1745_v19, %s1624_s6  ;;  %v543_v33 = vpop.permute.xlu0 %542  ;;  %v551_v35 = vmul.f32 %v1752_v21, %v549_v32 }
 0x188   :  { %v548_v34 = vsel %vm218_vm1, %v537_v30, %v543_v33 }
 0x189   :  { %v550_v36 = vmul.f32 %v1752_v21, %v548_v34  ;;  %v512_v37 = vpop.permute.xlu1 %511 }
 0x18b   :  { %556 = vrot.lane.b32.xlu1 %v551_v35, %s1624_s6  ;;  %554 = vrot.lane.b32.xlu0 %v550_v36, %s1624_s6  ;;  %v506_v38 = vpop.permute.xlu0 %505 }
 0x18c   :  { %v517_v39 = vsel %vm218_vm1, %v506_v38, %v512_v37  ;;  %v198_v37 = vmul.f32 %v1730_v16, %v1745_v19 }
 0x18d   :  { %v519_v40 = vmul.f32 %v1752_v21, %v517_v39  ;;  %v514_v41 = vpop.permute.xlu1 %513 }
 0x18f   :  { %500 = vrot.lane.b32.xlu0 %v1745_v19, %s1625_s20  ;;  %523 = vrot.lane.b32.xlu1 %v519_v40, %s1625_s20  ;;  %v508_v42 = vpop.permute.xlu0 %507 }
 0x190   :  { %v518_v43 = vsel %vm218_vm1, %v508_v42, %v514_v41 }
 0x191   :  { %v520_v44 = vmul.f32 %v1752_v21, %v518_v43 }
 0x193   :  { %525 = vrot.lane.b32.xlu0 %v520_v44, %s1625_s20  ;;  %v227_v45 = vpop.permute.xlu0 %226 }
 0x194   :  { %v229_v47 = vmul.f32 %v227_v45, %v1730_v16  ;;  %v230_v48 = vmul.f32 %v227_v45, %v1728_v14  ;;  %v199_v45 = vmul.f32 %v1728_v14, %v1745_v19  ;;  %v153_v19 = vand.u32 127, %v63_v8 }
 0x196   :  { %vm176_vm4 = vcmp.ge.s32.totalorder %v153_v19, 8  ;;  %vm179_vm5 = vcmp.lt.s32.totalorder %v153_v19, 16  ;;  %vm163_vm8 = vcmp.lt.s32.totalorder %v153_v19, 8  ;;  %vm166_vm9 = vcmp.ge.s32.totalorder %v1722_v9, %v153_v19 }
 0x197   :  { %204 = vrot.lane.b32.xlu0 %v200_v18, %s1622_s14  ;;  %v1488_v18 = vpop.eup %1487  ;;  %vm181_vm7 = vmand %vm176_vm4, %vm179_vm5 }
 0x198   :  { %v260_v22 = vsub.f32 1.0, %v1488_v18  ;;  %vm1824_vm11 = vmand %vm163_vm8, %vm166_vm9 }
 0x19a   :  { %v261_v24 = vmul.f32 32.0, %v260_v22 }
 0x19b   :  { %206 = vrot.lane.b32.xlu0 %v201_v17, %s1622_s14  ;;  %v563_v17 = vmul.f32 1.442695, %v562_v13 }
 0x19d   :  { %1489 = vpow2.f32 %v563_v17 }
 0x19e   :  { %1491 = vrsqrt.f32 %v261_v24 }
 0x1a7   :  { %v1490_v20 = vpop.eup %1489 }
 0x1a8   :  { %v565_v23 = vsub.f32 1.0, %v1490_v20  ;;  %v1492_v26 = vpop.eup %1491 }
 0x1aa   :  { %v566_v25 = vmul.f32 64.0, %v565_v23 }
 0x1ac   :  { %1493 = vrsqrt.f32 %v566_v25 }
 0x1b6   :  { %v1494_v27 = vpop.eup %1493 }
 0x1f1   :  { %v252_v46 = vpop.permute.xlu0 %251 }
 0x1f2   :  { %v256_v50 = vadd.f32 %v252_v46, %v230_v48 }
 0x1f5   :  { %v250_v49 = vpop.permute.xlu1 %249 }
 0x1f6   :  { %v255_v51 = vadd.f32 %v250_v49, %v229_v47 }
 0x1f8   :  { %v1465_v52 = vpack.i.bf16 %v256_v50, %v255_v51 }
 0x1f9   :  { %v532_v53 = vpop.permute.xlu1 %531 }
 0x1fa   :  { %1466 = vrot.lane.b32.xlu1 %v1465_v52, %s1626_s21  ;;  %v534_v54 = vmul.f32 %v532_v53, %v1730_v16  ;;  %v535_v55 = vmul.f32 %v532_v53, %v1728_v14  ;;  %v190_v52 = vsub.s32 %v1722_v9, %v153_v19 }
 0x1fd   :  { %v557_v56 = vpop.permute.xlu1 %556  ;;  %v555_v57 = vpop.permute.xlu0 %554 }
 0x1fe   :  { %v561_v58 = vadd.f32 %v557_v56, %v535_v55  ;;  %v560_v59 = vadd.f32 %v555_v57, %v534_v54  ;;  %212 = vrot.lane.b32.xlu1 %v1730_v16, %s1617_s12  ;;  %v192_v55 = vcvt.s32.f32 %v190_v52 }
 0x200   :  { %v1470_v60 = vpack.i.bf16 %v561_v58, %v560_v59  ;;  %v194_v57 = vsel %vm1824_vm11, %v192_v55, 0.0 }
 0x201   :  { %v501_v61 = vpop.permute.xlu0 %500  ;;  %v524_v0 = vpop.permute.xlu1 %523  ;;  %v263_v59 = vmul.f32 -0.031748697, %v194_v57  ;;  %v568_v63 = vmul.f32 -0.015748357, %v194_v57 }
 0x202   :  { %v503_v62 = vmul.f32 %v501_v61, %v1730_v16  ;;  %214 = vrot.lane.b32.xlu1 %v1728_v14, %s1617_s12  ;;  %1471 = vrot.lane.b32.xlu0 %v1470_v60, %s1627_s22  ;;  %v504_v2 = vmul.f32 %v501_v61, %v1728_v14 }
 0x203   :  { %v265_v61 = vmul.f32 1.442695, %v263_v59  ;;  %v570_v1 = vmul.f32 1.442695, %v568_v63 }
 0x204   :  { %v529_v3 = vadd.f32 %v524_v0, %v503_v62 }
 0x205   :  { %v526_v6 = vpop.permute.xlu0 %525 }
 0x206   :  { %v530_v10 = vadd.f32 %v526_v6, %v504_v2  ;;  %585 = vrot.lane.b32.xlu1 %v529_v3, %s1629_s23  ;;  %v1630_v3 = vmov 0.0  }
 0x208   :  { %587 = vrot.lane.b32.xlu0 %v530_v10, %s1629_s23  ;;  %v1240_v10 = vsel %vm1824_vm11, 1.0, %v1630_v3 }
 0x209   :  { %v205_v28 = vpop.permute.xlu0 %204 }
 0x20a   :  { %273 = vperm.xlu1 %1475, %v1492_v26  }
 0x20c   :  { %578 = vperm.xlu0 %1476, %v1494_v27  }
 0x20d   :  { %v207_v34 = vpop.permute.xlu0 %206 }
 0x26c   :  { %v1467_v29 = vpop.permute.xlu1 %1466 }
 0x26d   :  { %v1469_v30 = vunpack.i.h.bf16 %v1467_v29  ;;  %v1468_v31 = vunpack.i.l.bf16 %v1467_v29 }
 0x26f   :  { %v1394_v33 = vpack.c.bf16 %v1469_v30, %v1468_v31 }
 0x270   :  { %v213_v35 = vpop.permute.xlu1 %212 }
 0x271   :  { %v219_v36 = vsel %vm218_vm1, %v205_v28, %v213_v35  ;;  %1396 = vmatprep.subr.msk.bf16.mxu1 %vm1792_vm3, %v1394_v33 }
 0x272   :  { %v221_v38 = vmul.f32 %v1752_v21, %v219_v36  ;;  %1399 = vmatpush3.bf16.xpose.msk.msra.mxu1 %vm1792_vm3, %v1394_v33 }
 0x274   :  { %v223_v39 = vadd.f32 %v221_v38, %v198_v37  ;;  %v215_v40 = vpop.permute.xlu1 %214  ;;  %v1472_v41 = vpop.permute.xlu0 %1471 }
 0x275   :  { %v220_v42 = vsel %vm218_vm1, %v207_v34, %v215_v40  ;;  %v1474_v43 = vunpack.i.h.bf16 %v1472_v41  ;;  %v1473_v44 = vunpack.i.l.bf16 %v1472_v41 }
 0x276   :  { %v222_v46 = vmul.f32 %v1752_v21, %v220_v42  ;;  %1321 = vmatprep.mubr.msk.f32.mxu1 %vm284_vm2, %v223_v39  ;;  %v151_v21 = vadd.s32 8, %v1722_v9 }
 0x277   :  { %v1404_v47 = vpack.c.bf16 %v1474_v43, %v1473_v44  ;;  %v1477_v44 = vpack.i.bf16 %v1728_v14, %v1730_v16 }
 0x278   :  { %v224_v48 = vadd.f32 %v222_v46, %v199_v45  ;;  %v586_v49 = vpop.permute.xlu1 %585  ;;  %v191_v51 = vsub.s32 %v151_v21, %v153_v19  ;;  %vm167_vm6 = vcmp.ge.s32.totalorder %v151_v21, %v153_v19 }
 0x279   :  { %1406 = vmatprep.subr.msk.bf16.mxu1 %vm1792_vm3, %v1404_v47  ;;  %vm1820_vm10 = vmand %vm181_vm7, %vm167_vm6 }
 0x27a   :  { %1322 = vmatmul.mubr.msk.f32.vlgmr.msra.gmra.mrb[2].mxu1 %vm284_vm2, %v224_v48  ;;  %v588_v50 = vpop.permute.xlu0 %587  ;;  %v193_v53 = vcvt.s32.f32 %v191_v51  ;;  %v1241_v4 = vsel %vm1820_vm10, 1.0, %v1630_v3 }
 0x27b   :  { %1409 = vmatpush3.bf16.xpose.msk.msra.mxu1 %vm1792_vm3, %v1404_v47  ;;  %1335 = vmatprep.mubr.msk.f32.mxu1 %vm284_vm2, %v586_v49 }
 0x27c   :  { %v195_v56 = vsel %vm1820_vm10, %v193_v53, 0.0 }
 0x27d   :  { %v264_v58 = vmul.f32 -0.031748697, %v195_v56  ;;  %v569_v62 = vmul.f32 -0.015748357, %v195_v56 }
 0x27f   :  { %v267_v60 = vmul.f32 1.442695, %v264_v58  ;;  %v572_v0 = vmul.f32 1.442695, %v569_v62 }
 0x281   :  { %1495 = vpow2.f32 %v267_v60 }
 0x282   :  { %1336 = vmatmul.mubr.msk.f32.vlgmr.msra.gmra.mrb[4].mxu1 %vm284_vm2, %v588_v50  ;;  %1497 = vpow2.f32 %v265_v61 }
 0x283   :  { %1499 = vpow2.f32 %v572_v0 }
 0x284   :  { %1501 = vpow2.f32 %v570_v1 }
 0x289   :  { %v274_v15 = vpop.permute.xlu1 %273 }
 0x28b   :  { %v1496_v2 = vpop.eup %1495  ;;  %v579_v29 = vpop.permute.xlu0 %578 }
 0x28c   :  { %v1498_v6 = vpop.eup %1497  ;;  %v270_v12 = vmul.f32 %v1496_v2, %v1241_v4 }
 0x28d   :  { %v269_v13 = vmul.f32 %v1498_v6, %v1240_v10  ;;  %v1500_v18 = vpop.eup %1499 }
 0x28e   :  { %v277_v17 = vmul.f32 %v274_v15, %v270_v12  ;;  %v1502_v22 = vpop.eup %1501  ;;  %v575_v26 = vmul.f32 %v1500_v18, %v1241_v4 }
 0x28f   :  { %v276_v20 = vmul.f32 %v274_v15, %v269_v13  ;;  %v574_v28 = vmul.f32 %v1502_v22, %v1240_v10 }
 0x290   :  { %v582_v32 = vmul.f32 %v579_v29, %v575_v26 }
 0x291   :  { %v581_v34 = vmul.f32 %v579_v29, %v574_v28 }
 0x34d   :  { %v1323_v23 = vpop.f32.mrb[2].mxu1 }
 0x34e   :  { %v371_v24 = vmul.f32 %v1323_v23, %v277_v17  ;;  %v361_v25 = vpop.f32.mrb[3].mxu1 }
 0x34f   :  { %v370_v27 = vmul.f32 %v361_v25, %v276_v20 }
 0x350   :  { %v373_v30 = vand.u32 2147483647, %v371_v24 }
 0x351   :  { %v372_v31 = vand.u32 2147483647, %v370_v27 }
 0x352   :  { %v377_v33 = vsel %vm284_vm2, %v373_v30, 0.0 }
 0x353   :  { %378 = vadd.xlane.f32.xlu0 %v377_v33  ;;  %v374_v35 = vsel %vm284_vm2, %v372_v31, 0.0 }
 0x354   :  { %375 = vadd.xlane.f32.xlu1 %v374_v35 }
 0x355   :  { %v1337_v36 = vpop.f32.mrb[4].mxu1 }
 0x356   :  { %v679_v37 = vmul.f32 %v1337_v36, %v582_v32  ;;  %v669_v38 = vpop.f32.mrb[5].mxu1 }
 0x357   :  { %v678_v39 = vmul.f32 %v669_v38, %v581_v34 }
 0x358   :  { %v681_v40 = vand.u32 2147483647, %v679_v37 }
 0x359   :  { %v680_v41 = vand.u32 2147483647, %v678_v39 }
 0x35a   :  { %v685_v42 = vsel %vm284_vm2, %v681_v40, 0.0 }
 0x35b   :  { %686 = vadd.xlane.f32.xlu0 %v685_v42  ;;  %v682_v43 = vsel %vm284_vm2, %v680_v41, 0.0 }
 0x35c   :  { %683 = vadd.xlane.f32.xlu1 %v682_v43 }
 0x36d   :  { %1478 = vrot.lane.b32.xlu1 %v1477_v44, %s1631_s24 }
 0x371   :  { %1483 = vrot.lane.b32.xlu0 %v1477_v44, %s1624_s6 }
 0x3e0   :  { %v379_v45 = vpop.xlane.xlu0 %378 }
 0x3e1   :  { %v381_v46 = vmax.f32 %v379_v45, 1.0  ;;  %v376_v47 = vpop.xlane.xlu1 %375 }
 0x3e2   :  { %v380_v48 = vmax.f32 %v376_v47, 1.0 }
 0x3e3   :  { %v383_v49 = vmin.f32 %v381_v46, 50000.0 }
 0x3e4   :  { %v382_v50 = vmin.f32 %v380_v48, 50000.0 }
 0x3e6   :  { %1503 = vrcp.f32 %v382_v50 }
 0x3e7   :  { %1505 = vrcp.f32 %v383_v49 }
 0x3e8   :  { %v687_v19 = vpop.xlane.xlu0 %686 }
 0x3e9   :  { %v689_v21 = vmax.f32 %v687_v19, 1.0  ;;  %v684_v51 = vpop.xlane.xlu1 %683 }
 0x3ea   :  { %v688_v52 = vmax.f32 %v684_v51, 1.0 }
 0x3eb   :  { %v691_v53 = vmin.f32 %v689_v21, 50000.0 }
 0x3ec   :  { %v690_v54 = vmin.f32 %v688_v52, 50000.0  ;;  %v1484_v55 = vpop.permute.xlu0 %1483 }
 0x3ed   :  { %1507 = vrcp.f32 %v691_v53  ;;  %v1486_v8 = vunpack.i.h.bf16 %v1484_v55  ;;  %v1479_v56 = vpop.permute.xlu1 %1478  ;;  %v1485_v57 = vunpack.i.l.bf16 %v1484_v55  ;;  %v838_v53 = vld [vmem:[%s1960_s2] sm:$0xff] }
 0x3ee   :  { %1509 = vrcp.f32 %v690_v54  ;;  %v1481_v58 = vunpack.i.h.bf16 %v1479_v56  ;;  %v1480_v59 = vunpack.i.l.bf16 %v1479_v56  ;;  %v839_v54 = vld [vmem:[%s1960_s2 + $0x8] sm:$0xff] }
 0x3ef   :  { %v1410_v0 = vpack.c.bf16 %v1486_v8, %v1485_v57  ;;  %v1414_v55 = vpack.c.bf16 %v839_v54, %v838_v53  ;;  %v1254_v57 = vmul.f32 -1.442695, %v1730_v16  ;;  %v1103_v53 = vld [vmem:[%s1962_s4 + $0x20] sm:$0xff]  ;;  %v1104_v54 = vld [vmem:[%s1962_s4 + $0x28] sm:$0xff] }
 0x3f0   :  { %v1504_v60 = vpop.eup %1503  ;;  %v1400_v61 = vpack.c.bf16 %v1481_v58, %v1480_v59  ;;  %v1255_v58 = vmul.f32 -1.442695, %v1728_v14 }
 0x3f1   :  { %v1506_v62 = vpop.eup %1505  ;;  %v386_v63 = vmul.f32 %v1504_v60, %v370_v27 }
 0x3f2   :  { %1401 = vmatprep.subr.bf16.mxu0 %v1400_v61  ;;  %v387_v1 = vmul.f32 %v1506_v62, %v371_v24 }
 0x3f3   :  { %1403 = vmatpush3.bf16.msra.mxu0 %v1400_v61  ;;  %1328 = vmatprep.mubr.msk.f32.mxu0 %vm284_vm2, %v386_v63  ;;  %v840_v63 = vld [vmem:[%s1960_s2 + $0x10] sm:$0xff] }
 0x3f4   :  { %1411 = vmatprep.subr.bf16.mxu0 %v1410_v0 }
 0x3f6   :  { %1329 = vmatmul.mubr.msk.f32.vlgmr.msra.gmra.mrb[0].mxu0 %vm284_vm2, %v387_v1 }
 0x3f7   :  { %v1508_v2 = vpop.eup %1507  ;;  %1413 = vmatpush3.bf16.msra.mxu0 %v1410_v0  ;;  %v841_v0 = vld [vmem:[%s1960_s2 + $0x18] sm:$0xff] }
 0x3f8   :  { %v1510_v3 = vpop.eup %1509  ;;  %v695_v6 = vmul.f32 %v1508_v2, %v679_v37  ;;  %1415 = vmatprep.subr.bf16.mxu0 %v1414_v55  ;;  %v1418_v1 = vpack.c.bf16 %v841_v0, %v840_v63 }
 0x3f9   :  { %v694_v4 = vmul.f32 %v1510_v3, %v678_v39  ;;  %v494_v39 = vsub.s32 4, %v1722_v9 }
 0x3fb   :  { %1342 = vmatprep.mubr.msk.f32.mxu0 %vm284_vm2, %v694_v4  ;;  %v495_v40 = vrot.slane %v1725_v11, %v494_v39 }
 0x3fc   :  { %1343 = vmatmul.mubr.msk.f32.vlgmr.msra.gmra.mrb[2].mxu0 %vm284_vm2, %v695_v6 }
 0x3fd   :  { %1417 = vmatpush3.bf16.msra.mxu0 %v1414_v55  ;;  %v1438_v55 = vpack.c.bf16 %v1104_v54, %v1103_v53 }
 0x3fe   :  { %1419 = vmatprep.subr.bf16.mxu0 %v1418_v1 }
 0x401   :  { %1421 = vmatpush3.bf16.msra.mxu0 %v1418_v1 }
 0x4c9   :  { %v1330_v10 = vpop.f32.mrb[0].mxu0 }
 0x4ca   :  { %v466_v12 = vpop.f32.mrb[1].mxu0  ;;  %v476_v20 = vmul.f32 %v1330_v10, %v1330_v10 }
 0x4cb   :  { %v475_v23 = vmul.f32 %v466_v12, %v466_v12 }
 0x4cc   :  { %v480_v25 = vsel %vm284_vm2, %v476_v20, 0.0  ;;  %v844_v20 = vsub.s32 1, %v1722_v9 }
 0x4cd   :  { %v477_v26 = vsel %vm284_vm2, %v475_v23, 0.0 }
 0x4cf   :  { %v1344_v13 = vpop.f32.mrb[2].mxu0 }
 0x4d0   :  { %v784_v15 = vmul.f32 %v1344_v13, %v1344_v13  ;;  %v774_v17 = vpop.f32.mrb[3].mxu0 }
 0x4d1   :  { %v783_v18 = vmul.f32 %v774_v17, %v774_v17 }
 0x4d2   :  { %v788_v22 = vsel %vm284_vm2, %v784_v15, 0.0 }
 0x4d3   :  { %789 = vadd.xlane.f32.xlu0 %v788_v22  ;;  %v785_v24 = vsel %vm284_vm2, %v783_v18, 0.0 }
 0x4d4   :  { %786 = vadd.xlane.f32.xlu1 %v785_v24 }
 0x4d7   :  { %481 = vadd.xlane.f32.xlu0 %v480_v25 }
 0x4d8   :  { %478 = vadd.xlane.f32.xlu1 %v477_v26 }
 0x560   :  { %v790_v27 = vpop.xlane.xlu0 %789 }
 0x561   :  { %v792_v28 = vmul.f32 0.0625, %v790_v27  ;;  %v787_v29 = vpop.xlane.xlu1 %786 }
 0x562   :  { %v791_v30 = vmul.f32 0.0625, %v787_v29  ;;  %v956_v29 = vld [vmem:[%s1961_s3] sm:$0xff] }
 0x563   :  { %v794_v31 = vadd.f32 1e-08, %v792_v28 }
 0x564   :  { %v793_v32 = vadd.f32 1e-08, %v791_v30  ;;  %v482_v33 = vpop.xlane.xlu0 %481  ;;  %v957_v30 = vld [vmem:[%s1961_s3 + $0x8] sm:$0xff] }
 0x565   :  { %1511 = vrsqrt.f32 %v794_v31  ;;  %v485_v34 = vmul.f32 0.0625, %v482_v33  ;;  %v479_v35 = vpop.xlane.xlu1 %478  ;;  %v1422_v31 = vpack.c.bf16 %v957_v30, %v956_v29  ;;  %v959_v33 = vld [vmem:[%s1961_s3 + $0x18] sm:$0xff] }
 0x566   :  { %1513 = vrsqrt.f32 %v793_v32  ;;  %v484_v36 = vmul.f32 0.0625, %v479_v35  ;;  %v958_v32 = vld [vmem:[%s1961_s3 + $0x10] sm:$0xff] }
 0x567   :  { %v487_v37 = vadd.f32 1e-08, %v485_v34  ;;  %1423 = vmatprep.subr.bf16.mxu1 %v1422_v31  ;;  %v1426_v34 = vpack.c.bf16 %v959_v33, %v958_v32 }
 0x568   :  { %v486_v38 = vadd.f32 1e-08, %v484_v36  ;;  %1425 = vmatpush3.bf16.msra.mxu1 %v1422_v31 }
 0x569   :  { %1515 = vrsqrt.f32 %v487_v37  ;;  %1427 = vmatprep.subr.bf16.mxu1 %v1426_v34 }
 0x56a   :  { %1517 = vrsqrt.f32 %v486_v38 }
 0x56b   :  { %1519 = vpow2.f32 %v1254_v57 }
 0x56c   :  { %1521 = vpow2.f32 %v1255_v58  ;;  %1429 = vmatpush3.bf16.msra.mxu1 %v1426_v34  ;;  %v962_v58 = vsub.s32 2, %v1722_v9 }
 0x56f   :  { %v1512_v41 = vpop.eup %1511 }
 0x570   :  { %v1514_v42 = vpop.eup %1513  ;;  %v798_v43 = vmul.f32 %v1512_v41, %v1344_v13  ;;  %v950_v41 = vsub.s32 5, %v1722_v9 }
 0x571   :  { %v797_v44 = vmul.f32 %v1514_v42, %v774_v17 }
 0x572   :  { %v800_v45 = vmul.f32 %v798_v43, %v495_v40  ;;  %v951_v42 = vrot.slane %v1725_v11, %v950_v41 }
 0x573   :  { %v1516_v46 = vpop.eup %1515  ;;  %v799_v47 = vmul.f32 %v797_v44, %v495_v40 }
 0x574   :  { %v1518_v48 = vpop.eup %1517  ;;  %v491_v49 = vmul.f32 %v1516_v46, %v1330_v10  ;;  %805 = vrot.lane.b32.xlu0 %v800_v45, %s1625_s20 }
 0x575   :  { %v490_v50 = vmul.f32 %v1518_v48, %v466_v12  ;;  %803 = vrot.lane.b32.xlu1 %v799_v47, %s1625_s20  ;;  %v1520_v59 = vpop.eup %1519 }
 0x576   :  { %v497_v19 = vmul.f32 %v495_v40, %v491_v49  ;;  %v820_v60 = vadd.f32 1.0, %v1520_v59  ;;  %v1522_v61 = vpop.eup %1521  ;;  %v963_v59 = vrot.slane %v1725_v11, %v962_v58 }
 0x577   :  { %v496_v21 = vmul.f32 %v495_v40, %v490_v50  ;;  %v821_v62 = vadd.f32 1.0, %v1522_v61 }
 0x578   :  { %499 = vst.msk [vmem:[#allocation2 + $0x8] sm:$0xff] %vm284_vm2, %v497_v19  ;;  %1523 = vrcp.f32 %v820_v60  ;;  %v1099_v19 = vld [vmem:[%s1962_s4] sm:$0xff] }
 0x579   :  { %498 = vst.msk [vmem:[#allocation2] sm:$0xff] %vm284_vm2, %v496_v21  ;;  %1525 = vrcp.f32 %v821_v62  ;;  %v1100_v21 = vld [vmem:[%s1962_s4 + $0x8] sm:$0xff] }
 0x582   :  { %v1524_v2 = vpop.eup %1523 }
 0x583   :  { %v826_v3 = vmul.f32 %v1524_v2, %v1730_v16  ;;  %v1526_v4 = vpop.eup %1525  ;;  %v845_v16 = vrot.slane %v1725_v11, %v844_v20 }
 0x584   :  { %v827_v12 = vmul.f32 %v1526_v4, %v1728_v14 }
 0x5e6   :  { %v806_v51 = vpop.permute.xlu0 %805 }
 0x5e7   :  { %811 = vst.msk [vmem:[#allocation2 + $0x8] sm:$0xff] %vm809_vm12, %v806_v51  ;;  %v804_v52 = vpop.permute.xlu1 %803  ;;  %v1430_v51 = vpack.c.bf16 %v1100_v21, %v1099_v19 }
 0x5e8   :  { %810 = vst.msk [vmem:[#allocation2] sm:$0xff] %vm809_vm12, %v804_v52 }
 0x5e9   :  { %1431 = vmatprep.subr.bf16.mxu0 %v1430_v51 }
 0x5ee   :  { %v813_v56 = vld [vmem:[#allocation2 + $0x8] sm:$0xff] }
 0x5ef   :  { %v812_v8 = vld [vmem:[#allocation2] sm:$0xff] }
 0x5f0   :  { %830 = vrot.lane.b32.xlu1 %v812_v8, %s1626_s21  ;;  %v1105_v8 = vld [vmem:[%s1962_s4 + $0x30] sm:$0xff] }
 0x5f4   :  { %832 = vrot.lane.b32.xlu1 %v813_v56, %s1626_s21  ;;  %v1106_v56 = vld [vmem:[%s1962_s4 + $0x38] sm:$0xff] }
 0x5f5   :  { %v1442_v57 = vpack.c.bf16 %v1106_v56, %v1105_v8  ;;  %v1109_v8 = vsub.s32 3, %v1722_v9 }
 0x5f7   :  { %v1110_v56 = vrot.slane %v1725_v11, %v1109_v8 }
 0x662   :  { %v831_v6 = vpop.permute.xlu1 %830 }
 0x663   :  { %v836_v10 = vmul.f32 %v831_v6, %v826_v3 }
 0x665   :  { %848 = vrot.lane.b32.xlu0 %v836_v10, %s1623_s17 }
 0x666   :  { %v833_v13 = vpop.permute.xlu1 %832 }
 0x667   :  { %v837_v15 = vmul.f32 %v833_v13, %v827_v12 }
 0x669   :  { %850 = vrot.lane.b32.xlu1 %v837_v15, %s1623_s17 }
 0x6d7   :  { %v849_v17 = vpop.permute.xlu0 %848 }
 0x6d8   :  { %1353 = vmatprep.mubr.msk.f32.mxu0 %vm67_vm0, %v849_v17 }
 0x6db   :  { %v851_v18 = vpop.permute.xlu1 %850 }
 0x6dc   :  { %1354 = vmatmul.mubr.msk.f32.vlgmr.msra.gmra.mrb[4].mxu0 %vm67_vm0, %v851_v18 }
 0x6dd   :  { %1433 = vmatpush3.bf16.msra.mxu0 %v1430_v51 }
 0x7af   :  { %v1355_v22 = vpop.f32.mrb[4].mxu0 }
 0x7b0   :  { %v928_v23 = vadd.f32 %v1355_v22, %v845_v16  ;;  %v922_v24 = vpop.f32.mrb[5].mxu0 }
 0x7b1   :  { %v923_v25 = vadd.f32 %v922_v24, %v845_v16 }
 0x7b2   :  { %v932_v26 = vmul.f32 %v928_v23, %v928_v23 }
 0x7b3   :  { %v931_v14 = vmul.f32 %v923_v25, %v923_v25 }
 0x7b4   :  { %v936_v27 = vsel %vm67_vm0, %v932_v26, 0.0 }
 0x7b5   :  { %937 = vadd.xlane.f32.xlu1 %v936_v27  ;;  %v933_v28 = vsel %vm67_vm0, %v931_v14, 0.0 }
 0x7b6   :  { %934 = vadd.xlane.f32.xlu0 %v933_v28 }
 0x842   :  { %v938_v35 = vpop.xlane.xlu1 %937 }
 0x843   :  { %v941_v36 = vmul.f32 0.03125, %v938_v35  ;;  %v935_v37 = vpop.xlane.xlu0 %934 }
 0x844   :  { %v940_v38 = vmul.f32 0.03125, %v935_v37 }
 0x845   :  { %v943_v39 = vadd.f32 1e-08, %v941_v36 }
 0x846   :  { %v942_v40 = vadd.f32 1e-08, %v940_v38 }
 0x847   :  { %1527 = vrsqrt.f32 %v943_v39 }
 0x848   :  { %1529 = vrsqrt.f32 %v942_v40 }
 0x851   :  { %v1528_v43 = vpop.eup %1527 }
 0x852   :  { %v1530_v44 = vpop.eup %1529  ;;  %v947_v45 = vmul.f32 %v1528_v43, %v928_v23 }
 0x853   :  { %v946_v46 = vmul.f32 %v1530_v44, %v923_v25 }
 0x854   :  { %v953_v47 = vmul.f32 %v951_v42, %v947_v45 }
 0x855   :  { %v952_v48 = vmul.f32 %v951_v42, %v946_v46  ;;  %v1632_v46 = vmov -1.0  }
 0x856   :  { %v1901_v50 = vadd.f32 %v953_v47, %v1717_v7  ;;  %v1102_v7 = vld [vmem:[%s1962_s4 + $0x18] sm:$0xff] }
 0x857   :  { %v1898_v49 = vadd.f32 %v952_v48, %v1713_v5  ;;  %v1101_v5 = vld [vmem:[%s1962_s4 + $0x10] sm:$0xff]  ;;  %s1633_s4 = smov [#allocation8]  }
 0x858   :  { %v1434_v52 = vpack.c.bf16 %v1102_v7, %v1101_v5  ;;  %s1224_s29 = sshll.u32 %s1633_s4, 4  ;;  %s1225_s29 = int_to_ptr.vmem [resolvable:$true] %s1224_s29 }
 0x859   :  { %1364 = vmatprep.mubr.msk.f32.mxu1 %vm67_vm0, %v1898_v49  ;;  %s1587_s30 = scalar_lea.vmem %s1225_s29, 256  ;;  %p1592_p3 = scmp.lt.s32.totalorder %s1225_s29, %s1225_s29 }
 0x85a   :  { %1365 = vmatmul.mubr.msk.f32.vlgmr.msra.gmra.mrb[6].mxu1 %vm67_vm0, %v1901_v50  ;;  %1435 = vmatprep.subr.bf16.mxu0 %v1434_v52  ;;  %p1588_p2 = scmp.ne.s32.totalorder %s1225_s29, %s1587_s30  ;;  %p1593_p4 = scmp.lt.s32.totalorder %s1587_s30, %s1587_s30 }
 0x85b   :  { %1437 = vmatpush3.bf16.msra.mxu0 %v1434_v52 }
 0x85c   :  { %1439 = vmatprep.subr.bf16.mxu0 %v1438_v55  ;;  %p1594_p5 = por %p1593_p4, %p1592_p3 }
 0x85e   :  { %p1595_p6 = pnand %p1594_p5, %p1588_p2 }
 0x85f   :  { %1441 = vmatpush3.bf16.msra.mxu0 %v1438_v55 }
 0x860   :  { %1443 = vmatprep.subr.bf16.mxu0 %v1442_v57 }
 0x863   :  { %1445 = vmatpush3.bf16.msra.mxu0 %v1442_v57 }
 0x92d   :  { %v1366_v60 = vpop.f32.mrb[6].mxu1 }
 0x92e   :  { %v1042_v61 = vadd.f32 %v1366_v60, %v963_v59  ;;  %v1036_v62 = vpop.f32.mrb[7].mxu1 }
 0x92f   :  { %v1037_v63 = vadd.f32 %v1036_v62, %v963_v59 }
 0x930   :  { %v1048_v0 = vmul.f32 0.70710677, %v1042_v61  ;;  %v1046_v53 = vmul.f32 0.5, %v1042_v61 }
 0x931   :  { %v1047_v1 = vmul.f32 0.70710677, %v1037_v63  ;;  %v1045_v7 = vmul.f32 0.5, %v1037_v63 }
 0x932   :  { %v1054_v2 = vand.u32 2147483647, %v1048_v0  ;;  %vm1050_vm13 = vcmp.ge.f32.partialorder %v1048_v0, 0.0 }
 0x933   :  { %v1053_v3 = vand.u32 2147483647, %v1047_v1  ;;  %vm1049_vm14 = vcmp.ge.f32.partialorder %v1047_v1, 0.0  ;;  %v1052_v47 = vsel %vm1050_vm13, 1.0, %v1632_v46 }
 0x934   :  { %v1056_v4 = vmul.f32 0.3275911, %v1054_v2  ;;  %v1082_v13 = vsub.f32 0.0, %v1054_v2  ;;  %v1051_v21 = vsel %vm1049_vm14, 1.0, %v1632_v46 }
 0x935   :  { %v1055_v6 = vmul.f32 0.3275911, %v1053_v3  ;;  %v1081_v15 = vsub.f32 0.0, %v1053_v3 }
 0x936   :  { %v1058_v10 = vadd.f32 1.0, %v1056_v4  ;;  %v1084_v18 = vmul.f32 %v1082_v13, %v1054_v2 }
 0x937   :  { %v1057_v12 = vadd.f32 1.0, %v1055_v6  ;;  %v1083_v22 = vmul.f32 %v1081_v15, %v1053_v3 }
 0x938   :  { %1531 = vrcp.f32 %v1058_v10  ;;  %v1087_v25 = vmul.f32 1.442695, %v1084_v18 }
 0x939   :  { %1533 = vrcp.f32 %v1057_v12  ;;  %v1085_v27 = vmul.f32 1.442695, %v1083_v22  ;;  %v1211_v12 = vsub.s32 6, %v1722_v9 }
 0x93a   :  { %1535 = vpow2.f32 %v1087_v25 }
 0x93b   :  { %1537 = vpow2.f32 %v1085_v27  ;;  %v1212_v13 = vrot.slane %v1725_v11, %v1211_v12 }
 0x942   :  { %v1532_v17 = vpop.eup %1531 }
 0x943   :  { %v1534_v20 = vpop.eup %1533  ;;  %v1064_v16 = vmul.f32 1.0614054, %v1532_v17 }
 0x944   :  { %v1063_v23 = vmul.f32 1.0614054, %v1534_v20  ;;  %v1536_v40 = vpop.eup %1535 }
 0x945   :  { %v1066_v24 = vadd.f32 -1.4531521, %v1064_v16  ;;  %v1538_v42 = vpop.eup %1537 }
 0x946   :  { %v1065_v26 = vadd.f32 -1.4531521, %v1063_v23 }
 0x947   :  { %v1068_v14 = vmul.f32 %v1532_v17, %v1066_v24 }
 0x948   :  { %v1067_v28 = vmul.f32 %v1534_v20, %v1065_v26 }
 0x949   :  { %v1070_v29 = vadd.f32 1.4214138, %v1068_v14 }
 0x94a   :  { %v1069_v30 = vadd.f32 1.4214138, %v1067_v28 }
 0x94b   :  { %v1072_v31 = vmul.f32 %v1532_v17, %v1070_v29 }
 0x94c   :  { %v1071_v32 = vmul.f32 %v1534_v20, %v1069_v30 }
 0x94d   :  { %v1074_v33 = vadd.f32 -0.28449672, %v1072_v31 }
 0x94e   :  { %v1073_v34 = vadd.f32 -0.28449672, %v1071_v32 }
 0x94f   :  { %v1076_v35 = vmul.f32 %v1532_v17, %v1074_v33 }
 0x950   :  { %v1075_v36 = vmul.f32 %v1534_v20, %v1073_v34 }
 0x951   :  { %v1078_v37 = vadd.f32 0.2548296, %v1076_v35 }
 0x952   :  { %v1077_v38 = vadd.f32 0.2548296, %v1075_v36 }
 0x953   :  { %v1080_v39 = vmul.f32 %v1532_v17, %v1078_v37 }
 0x954   :  { %v1079_v41 = vmul.f32 %v1534_v20, %v1077_v38 }
 0x955   :  { %v1090_v43 = vmul.f32 %v1536_v40, %v1080_v39 }
 0x956   :  { %v1089_v44 = vmul.f32 %v1538_v42, %v1079_v41 }
 0x957   :  { %v1092_v45 = vsub.f32 1.0, %v1090_v43 }
 0x958   :  { %v1091_v48 = vsub.f32 1.0, %v1089_v44 }
 0x959   :  { %v1094_v19 = vmul.f32 %v1092_v45, %v1052_v47 }
 0x95a   :  { %v1093_v51 = vmul.f32 %v1091_v48, %v1051_v21 }
 0x95b   :  { %v1096_v5 = vadd.f32 1.0, %v1094_v19 }
 0x95c   :  { %v1095_v52 = vadd.f32 1.0, %v1093_v51 }
 0x95d   :  { %v1098_v55 = vmul.f32 %v1096_v5, %v1046_v53 }
 0x95e   :  { %v1097_v54 = vmul.f32 %v1095_v52, %v1045_v7 }
 0x960   :  { %1383 = vmatprep.mubr.msk.f32.mxu0 %vm1111_vm15, %v1097_v54 }
 0x961   :  { %1384 = vmatmul.mubr.msk.f32.vlgmr.msra.gmra.mrb[6].mxu0 %vm1111_vm15, %v1098_v55 }
 0xa34   :  { %v1385_v57 = vpop.f32.mrb[6].mxu0 }
 0xa35   :  { %v1184_v58 = vpop.f32.mrb[7].mxu0  ;;  %v1190_v59 = vadd.f32 %v1385_v57, %v1110_v56 }
 0xa36   :  { %v1185_v60 = vadd.f32 %v1184_v58, %v1110_v56 }
 0xa37   :  { %v1194_v1 = vmul.f32 %v1190_v59, %v1190_v59 }
 0xa38   :  { %v1193_v62 = vmul.f32 %v1185_v60, %v1185_v60 }
 0xa39   :  { %v1198_v61 = vsel %vm67_vm0, %v1194_v1, 0.0 }
 0xa3a   :  { %v1195_v0 = vsel %vm67_vm0, %v1193_v62, 0.0 }
 0xa3b   :  { %1196 = vadd.xlane.f32.xlu0 %v1195_v0 }
 0xa3f   :  { %1199 = vadd.xlane.f32.xlu0 %v1198_v61 }
 0xac8   :  { %v1197_v63 = vpop.xlane.xlu0 %1196 }
 0xac9   :  { %v1201_v2 = vmul.f32 0.03125, %v1197_v63 }
 0xacb   :  { %v1203_v3 = vadd.f32 1e-08, %v1201_v2 }
 0xacc   :  { %v1200_v4 = vpop.xlane.xlu0 %1199 }
 0xacd   :  { %1539 = vrsqrt.f32 %v1203_v3  ;;  %v1202_v6 = vmul.f32 0.03125, %v1200_v4 }
 0xacf   :  { %v1204_v10 = vadd.f32 1e-08, %v1202_v6 }
 0xad1   :  { %1541 = vrsqrt.f32 %v1204_v10 }
 0xad7   :  { %v1540_v15 = vpop.eup %1539 }
 0xad8   :  { %v1207_v17 = vmul.f32 %v1540_v15, %v1185_v60 }
 0xada   :  { %v1213_v18 = vmul.f32 %v1212_v13, %v1207_v17 }
 0xadb   :  { %v1542_v20 = vpop.eup %1541 }
 0xadc   :  { %v1208_v16 = vmul.f32 %v1542_v20, %v1190_v59  ;;  %v1215_v22 = vadd.f32 %v1213_v18, %v1898_v49 }
 0xade   :  { %v1214_v23 = vmul.f32 %v1212_v13, %v1208_v16  ;;  %1217 = vst.msk [vmem:[#allocation8] sm:$0xff] %vm67_vm0, %v1215_v22 }
 0xae0   :  { %v1216_v24 = vadd.f32 %v1214_v23, %v1901_v50 }
 0xae2   :  { %1218 = vst.msk [vmem:[#allocation8 + $0x8] sm:$0xff] %vm67_vm0, %v1216_v24 }
 0xae3   :  { %1598 = shalt.err (!%p1595_p6)
}
 0xae4   :  { %s1599_s9 = scalar_lea.hbm %s1965_s7, 256 }
 0xae5   :  { %p1600_p7 = scmp.ne.s32.totalorder %s1965_s7, %s1599_s9  ;;  %p1603_p8 = scmp.lt.u32.totalorder %s1599_s9, %s1965_s7 }
 0xae7   :  { %p1605_p9 = pnand %p1603_p8, %p1600_p7 }
 0xae9   :  { %1608 = shalt.err (!%p1605_p9)
}
 0xaea   :  { %1230 = dma.vmem_to_hbm [thread:$0]  %s1225_s29, 256, %s1965_s7, [#allocation5], %s1616_s11, %s1616_s11, %s1617_s12  }
 0xaeb   :  { %1613 = dma.done.wait [#allocation5], 256  }
 0xaec   :  { %1614 = vsyncadd [#allocation5], 4294967040 }
 0xaed   :  { %1234 = vsyncpa [#allocation4], 1 }
 0xaee   :  { %1235 = vsyncpa [#allocation7], 1 }
 0xaef   :  { %1236 = vsyncpa [#allocation5], 1 }

</bundles_post_ra>
